<compile_context>
chip_gen: v7x
topology: tpu7x:2x2x1
jax: 0.10.0
libtpu: 0.0.40
codegen_flags: <defaults>
</compile_context>

<pallas_src>
import functools

import jax
import jax.numpy as jnp
import numpy as np
from jax import lax
from jax.experimental import pallas as pl
from jax.experimental.pallas import tpu as pltpu
from jax.scipy.linalg import cho_solve, solve_triangular


def _round_up(x, m):
    return ((x + m - 1) // m) * m


# ---------------------------------------------------------------------------
# Pass 1: V = K_*n @ L^{-T} with the mean column fused in, streamed over
# train-point blocks (reduction axis last).
# ---------------------------------------------------------------------------
def _v_mean_kernel(xt_ref, xtr_ref, aug_ref, v_ref, mean_ref, acc_ref, *,
                   inv_ls, outputscale, mean_const, n_pad):
    """
    xt_ref  : (tm, Dp) f32  test points (zero-padded, unscaled)
    xtr_ref : (tn, Dp) f32  train points (zero-padded, pre-scaled by 1/ls)
    aug_ref : (tn, Np+128)  row block of [L^{-T} | alpha | 0]  (matmul dtype)
    v_ref   : (tm, Np)      V = K_*n L^{-T}                    (matmul dtype)
    mean_ref: (tm, 128) f32 lane-dense mean slab (column 0 holds the mean)
    acc_ref : (tm, Np+128) f32 accumulator scratch
    """
    k = pl.program_id(1)

    @pl.when(k == 0)
    def _init():
        acc_ref[...] = jnp.zeros_like(acc_ref)

    # RBF(test, train) block -- distance identity and exp kept in f32.
    xs = xt_ref[...] * inv_ls
    zs = xtr_ref[...]
    xs_sq = jnp.sum(xs * xs, axis=-1, keepdims=True)          # (tm, 1)
    zs_sq = jnp.sum(zs * zs, axis=-1)[None, :]                 # (1, tn)
    cross = lax.dot_general(xs, zs, (((1,), (1,)), ((), ())),
                            preferred_element_type=jnp.float32)
    d2 = jnp.maximum(xs_sq + zs_sq - 2.0 * cross, 0.0)
    k_star = outputscale * jnp.exp(-0.5 * d2)                  # (tm, tn) f32

    # Fused GEMM against [L^{-T} | alpha]: the mean GEMV rides along for free.
    acc_ref[...] += jnp.dot(k_star.astype(aug_ref.dtype), aug_ref[...],
                            preferred_element_type=jnp.float32)

    @pl.when(k == pl.num_programs(1) - 1)
    def _finalize():
        v_ref[...] = acc_ref[:, :n_pad].astype(v_ref.dtype)
        mean_ref[...] = acc_ref[:, n_pad:] + mean_const


def _predict_v_mean(xt_p, xtr_p, aug, *, inv_ls, outputscale, mean_const,
                    block_m, block_n):
    mp, dp = xt_p.shape
    n_pad = xtr_p.shape[0]
    naug = aug.shape[1]
    grid = (mp // block_m, n_pad // block_n)
    kernel = functools.partial(_v_mean_kernel, inv_ls=inv_ls,
                               outputscale=outputscale, mean_const=mean_const,
                               n_pad=n_pad)
    return pl.pallas_call(
        kernel,
        out_shape=(jax.ShapeDtypeStruct((mp, n_pad), aug.dtype),
                   jax.ShapeDtypeStruct((mp, 128), jnp.float32)),
        grid=grid,
        in_specs=[pl.BlockSpec((block_m, dp), lambda i, k: (i, 0)),
                  pl.BlockSpec((block_n, dp), lambda i, k: (k, 0)),
                  pl.BlockSpec((block_n, naug), lambda i, k: (k, 0))],
        out_specs=(pl.BlockSpec((block_m, n_pad), lambda i, k: (i, 0)),
                   pl.BlockSpec((block_m, 128), lambda i, k: (i, 0))),
        scratch_shapes=[pltpu.VMEM((block_m, naug), jnp.float32)],
        compiler_params=pltpu.CompilerParams(
            dimension_semantics=("parallel", "arbitrary"),
            vmem_limit_bytes=32 * 1024 * 1024),
    )(xt_p, xtr_p, aug)


# ---------------------------------------------------------------------------
# Pass 2: cov = K_** - V V^T as a blocked GEMM with in-kernel K_** finalize.
# ---------------------------------------------------------------------------
def _cov_kernel(vi_ref, vj_ref, xi_ref, xj_ref, cov_ref, acc_ref, *,
                inv_ls, outputscale):
    """
    vi_ref / vj_ref : (tm, tn)  V row blocks for test tiles i / j (matmul dtype)
    xi_ref / xj_ref : (tm, Dp)  test-point blocks (zero-padded, unscaled)
    cov_ref         : (tm, tm)  posterior covariance tile (f32)
    acc_ref         : (tm, tm)  f32 accumulator scratch
    """
    k = pl.program_id(2)

    @pl.when(k == 0)
    def _init():
        acc_ref[...] = jnp.zeros_like(acc_ref)

    acc_ref[...] += lax.dot_general(vi_ref[...], vj_ref[...],
                                    (((1,), (1,)), ((), ())),
                                    preferred_element_type=jnp.float32)

    @pl.when(k == pl.num_programs(2) - 1)
    def _finalize():
        xi = xi_ref[...] * inv_ls
        xj = xj_ref[...] * inv_ls
        xi_sq = jnp.sum(xi * xi, axis=-1, keepdims=True)
        xj_sq = jnp.sum(xj * xj, axis=-1)[None, :]
        cross = lax.dot_general(xi, xj, (((1,), (1,)), ((), ())),
                                preferred_element_type=jnp.float32)
        d2 = jnp.maximum(xi_sq + xj_sq - 2.0 * cross, 0.0)
        k_ss = outputscale * jnp.exp(-0.5 * d2)
        cov_ref[...] = k_ss - acc_ref[...]


def _predict_cov(v, xt_p, *, inv_ls, outputscale, block_m, block_n):
    mp, dp = xt_p.shape
    n_pad = v.shape[1]
    grid = (mp // block_m, mp // block_m, n_pad // block_n)
    kernel = functools.partial(_cov_kernel, inv_ls=inv_ls,
                               outputscale=outputscale)
    return pl.pallas_call(
        kernel,
        out_shape=jax.ShapeDtypeStruct((mp, mp), jnp.float32),
        grid=grid,
        in_specs=[pl.BlockSpec((block_m, block_n), lambda i, j, k: (i, k)),
                  pl.BlockSpec((block_m, block_n), lambda i, j, k: (j, k)),
                  pl.BlockSpec((block_m, dp), lambda i, j, k: (i, 0)),
                  pl.BlockSpec((block_m, dp), lambda i, j, k: (j, 0))],
        out_specs=pl.BlockSpec((block_m, block_m), lambda i, j, k: (i, j)),
        scratch_shapes=[pltpu.VMEM((block_m, block_m), jnp.float32)],
        compiler_params=pltpu.CompilerParams(
            dimension_semantics=("parallel", "parallel", "arbitrary"),
            vmem_limit_bytes=32 * 1024 * 1024),
    )(v, v, xt_p, xt_p)


# ---------------------------------------------------------------------------
# Wrapper class mirroring svise's SingleTaskGP forward pass.
# ---------------------------------------------------------------------------
class SingleTaskGPPallas:
    def __init__(self, train_x, train_y, noise=0.05, lengthscale=0.8,
                 outputscale=1.2, use_bf16_matmul=True,
                 block_m=128, block_n=128):
        # TODO(synk): fit_gpytorch_model (MLL hyperparameter optimisation) has
        # no Pallas equivalent; hyperparameters are set deterministically here.
        train_x = jnp.asarray(train_x, jnp.float32)
        train_y = jnp.asarray(train_y, jnp.float32)
        n, d = train_x.shape

        self.lengthscale = float(lengthscale)
        self.outputscale = float(outputscale)
        # FixedNoiseGaussianLikelihood's argument is a noise *variance* added
        # to the diagonal of K_nn; `noise` is used with the same meaning here.
        self.noise = float(noise)
        self.mean_const = float(jnp.mean(train_y))
        self.inv_ls = 1.0 / self.lengthscale
        self.block_m = int(block_m)
        self.block_n = int(block_n)
        self.mm_dtype = jnp.bfloat16 if use_bf16_matmul else jnp.float32

        # ---- one-time train-side linear algebra (plain JAX; the Cholesky /
        # triangular solves have no clean Pallas equivalent). ----
        zs = train_x * self.inv_ls                       # pre-scaled train pts
        d2 = jnp.sum((zs[:, None, :] - zs[None, :, :]) ** 2, axis=-1)
        k_nn = self.outputscale * jnp.exp(-0.5 * d2)
        a_mat = k_nn + self.noise * jnp.eye(n, dtype=jnp.float32)
        chol = jnp.linalg.cholesky(a_mat)                          # A = L L^T
        alpha = cho_solve((chol, True), train_y - self.mean_const)  # A^{-1}(y-c)
        linv_t = solve_triangular(chol, jnp.eye(n, dtype=jnp.float32),
                                  lower=True).T                     # L^{-T}

        # ---- pad + pack for the kernels ----
        self.n, self.d = n, d
        self.dp = _round_up(max(d, 1), 128)              # lane-dense features
        self.np_ = _round_up(n, self.block_n)
        self.train_x_scaled_p = jnp.pad(
            zs, ((0, self.np_ - n), (0, self.dp - d)))
        linv_t_p = jnp.pad(linv_t, ((0, self.np_ - n), (0, self.np_ - n)))
        alpha_blk = jnp.zeros((self.np_, 128), jnp.float32).at[:n, 0].set(alpha)
        # aug = [ L^{-T} | alpha | 0 ]  (padded rows are zero -> fake train
        # points contribute nothing; padded columns are zero -> V[:, n:] == 0)
        self.aug = jnp.concatenate([linv_t_p, alpha_blk],
                                   axis=1).astype(self.mm_dtype)

        # kept (unpadded, f32) for the pure-JAX references / debugging
        self.train_x = train_x
        self._chol = chol
        self._alpha = alpha
        self._linv_t = linv_t

    def __call__(self, x, full_covariance=True):
        x = jnp.asarray(x, jnp.float32)
        m, d = x.shape
        mp = _round_up(m, self.block_m)
        xt_p = jnp.pad(x, ((0, mp - m), (0, self.dp - d)))

        v, mean_slab = _predict_v_mean(
            xt_p, self.train_x_scaled_p, self.aug,
            inv_ls=self.inv_ls, outputscale=self.outputscale,
            mean_const=self.mean_const,
            block_m=self.block_m, block_n=self.block_n)
        cov_p = _predict_cov(
            v, xt_p, inv_ls=self.inv_ls, outputscale=self.outputscale,
            block_m=self.block_m, block_n=self.block_n)

        mean = mean_slab[:m, 0]
        cov = cov_p[:m, :m]
        if full_covariance:
            return mean, cov
        # clamp tiny negative variances from cancellation in K_** - V V^T
        return mean, jnp.maximum(jnp.diagonal(cov), 0.0)


# ---------------------------------------------------------------------------
# Pure-JAX references for correctness checks.
# ---------------------------------------------------------------------------
def _reference_forward(gp, x):
    """Full-f32 analytic reference (direct squared-distance formula)."""
    def rbf(a, b):
        d2 = jnp.sum((a[:, None, :] - b[None, :, :]) ** 2, axis=-1)
        return gp.outputscale * jnp.exp(-0.5 * d2 * gp.inv_ls ** 2)

    k_star = rbf(x, gp.train_x)
    k_ss = rbf(x, x)
    mean = gp.mean_const + k_star @ gp._alpha
    ainv = cho_solve((gp._chol, True), jnp.eye(gp.n, dtype=jnp.float32))
    cov = k_ss - k_star @ ainv @ k_star.T
    return mean, cov


def _reference_forward_matched(gp, x):
    """Reference mirroring the kernel's matmul-operand dtype (e.g. bf16)."""
    mm = gp.mm_dtype
    xs = x * gp.inv_ls
    zs = gp.train_x * gp.inv_ls
    d2 = jnp.maximum(jnp.sum(xs * xs, -1, keepdims=True)
                     + jnp.sum(zs * zs, -1)[None, :] - 2.0 * xs @ zs.T, 0.0)
    k_star = gp.outputscale * jnp.exp(-0.5 * d2)
    d2ss = jnp.maximum(jnp.sum(xs * xs, -1, keepdims=True)
                       + jnp.sum(xs * xs, -1)[None, :] - 2.0 * xs @ xs.T, 0.0)
    k_ss = gp.outputscale * jnp.exp(-0.5 * d2ss)
    v = jnp.dot(k_star.astype(mm), gp._linv_t.astype(mm),
                preferred_element_type=jnp.float32).astype(mm)
    mean = gp.mean_const + jnp.dot(k_star.astype(mm), gp._alpha.astype(mm),
                                   preferred_element_type=jnp.float32)
    cov = k_ss - jnp.dot(v, v.T, preferred_element_type=jnp.float32)
    return mean, cov


if __name__ == "__main__":
    key = jax.random.PRNGKey(0)
    kx, ky, kt = jax.random.split(key, 3)

    # Non-multiples of the 128 block size exercise the padding path; the grid
    # for pass 1 is (2, 3) and for pass 2 is (2, 2, 3).
    N, M, D = 300, 200, 4
    train_x = jax.random.normal(kx, (N, D), jnp.float32)
    train_y = (jnp.sin(jnp.sum(train_x, axis=-1))
               + 0.1 * jax.random.normal(ky, (N,), jnp.float32))
    x_test = jax.random.normal(kt, (M, D), jnp.float32)

    # --- f32 matmul variant: tight check against the analytic reference. ---
    gp32 = SingleTaskGPPallas(train_x, train_y, noise=0.05,
                              use_bf16_matmul=False)
    mean32, cov32 = gp32(x_test, full_covariance=True)
    _, var32 = gp32(x_test, full_covariance=False)
    jax.block_until_ready((mean32, cov32, var32))

    ref_mean, ref_cov = _reference_forward(gp32, x_test)
    np.testing.assert_allclose(np.asarray(mean32), np.asarray(ref_mean),
                               rtol=1e-3, atol=1e-3)
    np.testing.assert_allclose(np.asarray(cov32), np.asarray(ref_cov),
                               rtol=1e-3, atol=1e-3)
    np.testing.assert_allclose(np.asarray(var32),
                               np.maximum(np.diag(np.asarray(ref_cov)), 0.0),
                               rtol=1e-3, atol=1e-3)

    # --- bf16 MXU-operand variant (default): checked against a pure-JAX
    # reference that applies the same operand casts (f32 accumulation). ---
    gp16 = SingleTaskGPPallas(train_x, train_y, noise=0.05,
                              use_bf16_matmul=True)
    mean16, cov16 = gp16(x_test, full_covariance=True)
    jax.block_until_ready((mean16, cov16))

    ref_mean16, ref_cov16 = _reference_forward_matched(gp16, x_test)
    np.testing.assert_allclose(np.asarray(mean16), np.asarray(ref_mean16),
                               rtol=1e-2, atol=1e-2)
    np.testing.assert_allclose(np.asarray(cov16), np.asarray(ref_cov16),
                               rtol=1e-2, atol=1e-2)

    print("KERNEL_OK")
</pallas_src>

<mosaic_0001>
module attributes {stable_mosaic.version = 11 : i64} {
  func.func @_v_mean_kernel(%arg0: i32, %arg1: i32, %arg2: memref<128x128xf32, #tpu.memory_space<vmem>>, %arg3: memref<128x128xf32, #tpu.memory_space<vmem>>, %arg4: memref<128x512xf32, #tpu.memory_space<vmem>>, %arg5: memref<128x384xf32, #tpu.memory_space<vmem>>, %arg6: memref<128x128xf32, #tpu.memory_space<vmem>>, %arg7: memref<128x512xf32, #tpu.memory_space<vmem>>) attributes {dimension_semantics = [#tpu.dimension_semantics<parallel>, #tpu.dimension_semantics<arbitrary>], iteration_bounds = array<i64: 2, 3>, scalar_prefetch = 0 : i64, scratch_operands = 1 : i64, tpu.core_type = #tpu.core_type<tc>, window_params = [{transform_indices = @transform_0, window_bounds = array<i64: 128, 128>}, {transform_indices = @transform_1, window_bounds = array<i64: 128, 128>}, {transform_indices = @transform_2, window_bounds = array<i64: 128, 512>}, {transform_indices = @transform_3, window_bounds = array<i64: 128, 384>}, {transform_indices = @transform_4, window_bounds = array<i64: 128, 128>}]} {
    %c0_i32 = arith.constant 0 : i32
    %0 = arith.cmpi eq, %arg1, %c0_i32 : i32
    %1 = arith.extui %0 : i1 to i32
    %c0_i32_0 = arith.constant 0 : i32
    %2 = arith.cmpi ne, %1, %c0_i32_0 : i32
    scf.if %2 {
      %cst_19 = arith.constant 0.000000e+00 : f32
      %35 = vector.broadcast %cst_19 : f32 to vector<128x512xf32>
      %c0_20 = arith.constant 0 : index
      %c0_21 = arith.constant 0 : index
      %36 = vector.load %arg7[%c0_20, %c0_21] : memref<128x512xf32, #tpu.memory_space<vmem>>, vector<128x512xf32>
      tpu.vector_store %arg7[%c0_20, %c0_21], %35 {strides = array<i32>} : memref<128x512xf32, #tpu.memory_space<vmem>>, vector<128x512xf32>,
    } else {
    }
    %c0 = arith.constant 0 : index
    %c0_1 = arith.constant 0 : index
    %3 = vector.load %arg2[%c0, %c0_1] : memref<128x128xf32, #tpu.memory_space<vmem>>, vector<128x128xf32>
    %cst = arith.constant 1.250000e+00 : f32
    %4 = vector.broadcast %cst : f32 to vector<128x128xf32>
    %5 = arith.mulf %3, %4 : vector<128x128xf32>
    %c0_2 = arith.constant 0 : index
    %c0_3 = arith.constant 0 : index
    %6 = vector.load %arg3[%c0_2, %c0_3] : memref<128x128xf32, #tpu.memory_space<vmem>>, vector<128x128xf32>
    %7 = arith.mulf %5, %5 : vector<128x128xf32>
    %cst_4 = arith.constant dense<0.000000e+00> : vector<128xf32>
    %8 = vector.multi_reduction <add>, %7, %cst_4 [1] : vector<128x128xf32> to vector<128xf32>
    %9 = vector.shape_cast %8 : vector<128xf32> to vector<128x1xf32>
    %10 = arith.mulf %6, %6 : vector<128x128xf32>
    %cst_5 = arith.constant dense<0.000000e+00> : vector<128xf32>
    %11 = vector.multi_reduction <add>, %10, %cst_5 [1] : vector<128x128xf32> to vector<128xf32>
    %12 = vector.shape_cast %11 : vector<128xf32> to vector<1x128xf32>
    %cst_6 = arith.constant dense<0.000000e+00> : vector<128x128xf32>
    %13 = tpu.matmul %5, %6, %cst_6 {dimension_numbers = #tpu.dot_dimension_numbers<[1], [1], [0], [0], [0, 0, 1, 0], [], []>} : vector<128x128xf32>, vector<128x128xf32>, vector<128x128xf32> -> vector<128x128xf32>
    %14 = vector.broadcast %9 : vector<128x1xf32> to vector<128x128xf32>
    %15 = vector.broadcast %12 : vector<1x128xf32> to vector<128x128xf32>
    %16 = arith.addf %14, %15 : vector<128x128xf32>
    %cst_7 = arith.constant 2.000000e+00 : f32
    %17 = vector.broadcast %cst_7 : f32 to vector<128x128xf32>
    %18 = arith.mulf %17, %13 : vector<128x128xf32>
    %19 = arith.subf %16, %18 : vector<128x128xf32>
    %cst_8 = arith.constant 0.000000e+00 : f32
    %20 = vector.broadcast %cst_8 : f32 to vector<128x128xf32>
    %21 = arith.maximumf %19, %20 : vector<128x128xf32>
    %cst_9 = arith.constant -5.000000e-01 : f32
    %22 = vector.broadcast %cst_9 : f32 to vector<128x128xf32>
    %23 = arith.mulf %22, %21 : vector<128x128xf32>
    %24 = math.exp %23 : vector<128x128xf32>
    %cst_10 = arith.constant 1.200000e+00 : f32
    %25 = vector.broadcast %cst_10 : f32 to vector<128x128xf32>
    %26 = arith.mulf %25, %24 : vector<128x128xf32>
    %c0_11 = arith.constant 0 : index
    %c0_12 = arith.constant 0 : index
    %27 = vector.load %arg7[%c0_11, %c0_12] : memref<128x512xf32, #tpu.memory_space<vmem>>, vector<128x512xf32>
    %c0_13 = arith.constant 0 : index
    %c0_14 = arith.constant 0 : index
    %28 = vector.load %arg4[%c0_13, %c0_14] : memref<128x512xf32, #tpu.memory_space<vmem>>, vector<128x512xf32>
    %cst_15 = arith.constant dense<0.000000e+00> : vector<128x512xf32>
    %29 = tpu.matmul %26, %28, %cst_15 {dimension_numbers = #tpu.dot_dimension_numbers<[1], [0], [0], [1], [0, 0, 1, 1], [], []>} : vector<128x128xf32>, vector<128x512xf32>, vector<128x512xf32> -> vector<128x512xf32>
    %30 = arith.addf %27, %29 : vector<128x512xf32>
    %c0_16 = arith.constant 0 : index
    %c0_17 = arith.constant 0 : index
    %31 = vector.load %arg7[%c0_16, %c0_17] : memref<128x512xf32, #tpu.memory_space<vmem>>, vector<128x512xf32>
    tpu.vector_store %arg7[%c0_16, %c0_17], %30 {strides = array<i32>} : memref<128x512xf32, #tpu.memory_space<vmem>>, vector<128x512xf32>,
    %c2_i32 = arith.constant 2 : i32
    %32 = arith.cmpi eq, %arg1, %c2_i32 : i32
    %33 = arith.extui %32 : i1 to i32
    %c0_i32_18 = arith.constant 0 : i32
    %34 = arith.cmpi ne, %33, %c0_i32_18 : i32
    scf.if %34 {
      %c0_19 = arith.constant 0 : index
      %c0_20 = arith.constant 0 : index
      %35 = vector.load %arg7[%c0_19, %c0_20] : memref<128x512xf32, #tpu.memory_space<vmem>>, vector<128x384xf32>
      %c0_21 = arith.constant 0 : index
      %c0_22 = arith.constant 0 : index
      %36 = vector.load %arg5[%c0_21, %c0_22] : memref<128x384xf32, #tpu.memory_space<vmem>>, vector<128x384xf32>
      tpu.vector_store %arg5[%c0_21, %c0_22], %35 {strides = array<i32>} : memref<128x384xf32, #tpu.memory_space<vmem>>, vector<128x384xf32>,
      %c0_23 = arith.constant 0 : index
      %c384 = arith.constant 384 : index
      %37 = vector.load %arg7[%c0_23, %c384] : memref<128x512xf32, #tpu.memory_space<vmem>>, vector<128x128xf32>
      %cst_24 = arith.constant 0.0283332709 : f32
      %38 = vector.broadcast %cst_24 : f32 to vector<128x128xf32>
      %39 = arith.addf %37, %38 : vector<128x128xf32>
      %c0_25 = arith.constant 0 : index
      %c0_26 = arith.constant 0 : index
      %40 = vector.load %arg6[%c0_25, %c0_26] : memref<128x128xf32, #tpu.memory_space<vmem>>, vector<128x128xf32>
      tpu.vector_store %arg6[%c0_25, %c0_26], %39 {strides = array<i32>} : memref<128x128xf32, #tpu.memory_space<vmem>>, vector<128x128xf32>,
    } else {
    }
    return
  }
  func.func @transform_0(%arg0: i32, %arg1: i32) -> (i32, i32) {
    %c0_i32 = arith.constant 0 : i32
    %c0_i32_0 = arith.constant 0 : i32
    return %arg0, %c0_i32 : i32, i32
  }
  func.func @transform_1(%arg0: i32, %arg1: i32) -> (i32, i32) {
    %c0_i32 = arith.constant 0 : i32
    %c0_i32_0 = arith.constant 0 : i32
    return %arg1, %c0_i32 : i32, i32
  }
  func.func @transform_2(%arg0: i32, %arg1: i32) -> (i32, i32) {
    %c0_i32 = arith.constant 0 : i32
    %c0_i32_0 = arith.constant 0 : i32
    return %arg1, %c0_i32 : i32, i32
  }
  func.func @transform_3(%arg0: i32, %arg1: i32) -> (i32, i32) {
    %c0_i32 = arith.constant 0 : i32
    %c0_i32_0 = arith.constant 0 : i32
    return %arg0, %c0_i32 : i32, i32
  }
  func.func @transform_4(%arg0: i32, %arg1: i32) -> (i32, i32) {
    %c0_i32 = arith.constant 0 : i32
    %c0_i32_0 = arith.constant 0 : i32
    return %arg0, %c0_i32 : i32, i32
  }
}

</mosaic_0001>

<bundles_post_ra>
// kernel: tpu_custom_call.1
= control target key start
LH: loop header
LB: loop body
LE: loop exit
PB: predicated region body
PF: predicated region fallthrough
CT: control target
= control target key end

     0   :  { %s3355_s0 = inlined_call_operand.hbm [shape: f32[256,128], index: 0, kind: input, shape index: {}]   ;;  %s3356_s1 = inlined_call_operand.hbm [shape: f32[384,128], index: 1, kind: input, shape index: {}]   ;;  %s3357_s2 = inlined_call_operand.hbm [shape: f32[384,512], index: 2, kind: input, shape index: {}]   ;;  %s3358_s3 = inlined_call_operand.hbm [shape: f32[256,384], index: 3, kind: output, shape index: {0}]   ;;  %s3359_s4 = inlined_call_operand.hbm [shape: f32[256,128], index: 4, kind: output, shape index: {1}]  }
   0x1   :  { %3378 = sst [smem:[#allocation25_spill]] %s3356_s1 }
   0x2   :  { %3379 = sst [smem:[#allocation26_spill]] %s3358_s3 }
   0x3   :  { %3380 = sst [smem:[#allocation27_spill]] %s3359_s4 }
   0x4   :  { %10 = vsyncpa [#allocation4], 0 }
   0x5   :  { %12 = vsyncpa [#allocation4 + $0x1], 0 }
   0x6   :  { %13 = vsyncpa [#allocation7], 0 }
   0x7   :  { %15 = vsyncpa [#allocation7 + $0x1], 0 }
   0x8   :  { %16 = vsyncpa [#allocation5], 0 }
   0x9   :  { %18 = vsyncpa [#allocation5 + $0x1], 0 }
   0xa   :  { %19 = vsyncpa [#allocation11], 0 }
   0xb   :  { %21 = vsyncpa [#allocation11 + $0x1], 0  ;;  %s2553_s15 = smov 0   ;;  %s2555_s16 = smov 0  }
   0xc   :  { %s2557_s17 = smov 0   ;;  %s2559_s18 = smov 0  }
   0xd   :  { %s2561_s19 = smov 0   ;;  %s2563_s20 = smov 0  }
   0xe   :  { %s2565_s21 = smov 0   ;;  %s2567_s22 = smov 0  }
   0xf   :  { %s2569_s23 = smov 0   ;;  %s2571_s24 = smov 0  }
  0x10   :  { %s2573_s25 = smov 0  }
  0x11 LB: > { %3381 = sst [smem:[#allocation16_spill]] %s2479_s17  ;;  %s2607_s26 = sadd.s32 4294967295, %s2511_s25   ;;  %s2511_s25 = sphi %s2573_s25, %s27_s25   ;;  %s2507_s24 = sphi %s2571_s24, %s3423_s24   ;;  %s2503_s23 = sphi %s2569_s23, %s3422_s23   ;;  %s2499_s22 = sphi %s2567_s22, %s3421_s22   ;;  %s2495_s21 = sphi %s2565_s21, %s3429_s21   ;;  %s2491_s20 = sphi %s2563_s20, %s3428_s20   ;;  %s2487_s19 = sphi %s2561_s19, %s3427_s19   ;;  %s2483_s18 = sphi %s2559_s18, %s3426_s18   ;;  %s2479_s17 = sphi %s2557_s17, %s3417_s17   ;;  %s2475_s16 = sphi %s2555_s16, %s3425_s16   ;;  %s2471_s15 = sphi %s2553_s15, %s3424_s15  }
  0x12   : > { %3382 = sst [smem:[#allocation17_spill]] %s2483_s18  ;;  %s36_s27 = sadd.s32 1, %s2503_s23 }
  0x13   : > { %3383 = sst [smem:[#allocation18_spill]] %s2491_s20  ;;  %p2610_p0 = scmp.ge.s32.totalorder %s36_s27, 3 }
  0x14   : > { %3384 = sst [smem:[#allocation19_spill]] %s2503_s23  ;;  %p3363_p1 = scmp.eq.s32.totalorder %s2511_s25, 0 }
  0x15   : > { %3385 = sst [smem:[#allocation20_spill]] %s2507_s24  ;;  %p3362_p2 = scmp.eq.s32.totalorder %s2607_s26, 0 }
  0x16   : > { %s72_s29 = sadd.s32 1, %s2479_s17  ;;  %s3431_s27 = smov (%p2610_p0, %s36_s27), 0 }
  0x17   : > { %3387 = sst [smem:[#allocation21_spill]] %s3431_s27  ;;  %p79_p3 = scmp.ne.s32.totalorder %s2479_s17, %s2475_s16 }
  0x18   : > { %p85_p4 = scmp.ne.s32.totalorder %s2475_s16, %s2471_s15  ;;  %s69_s30 = ssub.s32 %s2503_s23, %s3431_s27 }
  0x19   : > { %p70_p5 = scmp.eq.s32.totalorder %s69_s30, 0  ;;  %p81_p6 = por %p79_p3, %p3363_p1 }
  0x1a   : > { %p2630_p7 = por %p85_p4, %p3362_p2  ;;  %p3361_p8 = scmp.lt.s32.totalorder %s2511_s25, 6 }
  0x1b   : > { %s2636_s6 = scalar_select %p70_p5, %s2479_s17, %s72_s29  }
  0x1c   : > { %s3388_s5 = scalar_select %p2630_p7, 1, 0 }
  0x1d   : > { %3389 = sst [smem:[#allocation22_spill]] %s2636_s6  ;;  %s208_s7 = sand.u32 1, %s2511_s25  }
  0x1e   : > { %s210_s8 = sand.u32 1, %s2479_s17   ;;  %s1898_s10 = sshll.u32 %s2503_s23, 11 }
  0x1f   : > { %s1875_s9 = sshll.u32 %s210_s8, 7  ;;  %s3390_s1 = sld [smem:[#allocation25_spill]] }
  0x20   : > { %s212_s14 = scalar_lea.vmem [#allocation6], %s1875_s9  ;;  %p2650_p9 = pnand %p3361_p8, %p81_p6 }
  0x21   : > { %s219_s15 = sshll.u32 %s212_s14, 4  ;;  %s2654_s30 = sshll.u32 %s210_s8, 9  ;;  %s2646_s15 = int_to_ptr.vmem [resolvable:$true] %s219_s15 }
  0x22   : > { %p3375_p12 = pneg %p2650_p9 }
  0x25   : > { %s2644_s13 = scalar_lea.hbm %s3390_s1, %s1898_s10  ;;  %s2657_s10 = scalar_lea.sflag [#allocation7], %s208_s7 }
  0x26   : > { %s2263_s11 = scalar_lea.hbm %s2644_s13, 2048  ;;  %s2268_s14 = scalar_lea.hbm %s3390_s1, 6144 }
  0x27   : > { %p2264_p11 = scmp.ne.s32.totalorder %s2644_s13, %s2263_s11  ;;  %p2269_p4 = scmp.lt.u32.totalorder %s2644_s13, %s3390_s1 }
  0x28   : > { %p2270_p5 = scmp.lt.u32.totalorder %s2268_s14, %s2263_s11  ;;  %p2272_p8 = scmp.lt.u32.totalorder %s2263_s11, %s2644_s13 }
  0x29   : > { %p2266_p13 = pnand %p3375_p12, %p2264_p11 }
  0x2a   : > { %p2271_p6 = por %p2270_p5, %p2269_p4 }
  0x2b   : > { %p2267_p3 = pneg %p2266_p13 }
  0x2c   : > { %p2273_p2 = por %p2272_p8, %p2271_p6 }
  0x2e   : > { %p2274_p1 = pnand %p2273_p2, %p2267_p3 }
  0x30   : > { %2277 = shalt.err (!%p2274_p1)
}
  0x31   : > { %s2278_s7 = scalar_lea.vmem %s2646_s15, 2048  ;;  %s2513_s8 = smov [#allocation6]  }
  0x32   : > { %p2279_p11 = scmp.ne.s32.totalorder %s2646_s15, %s2278_s7  ;;  %s2283_s9 = sshll.u32 %s2513_s8, 4  ;;  %s2284_s9 = int_to_ptr.vmem [resolvable:$false] %s2283_s9 }
  0x33   : > { %s2285_s27 = scalar_lea.vmem %s2284_s9, 4096  ;;  %p2286_p7 = scmp.lt.s32.totalorder %s2646_s15, %s2284_s9 }
  0x34   : > { %p2281_p13 = pnand %p2279_p11, %p3375_p12  ;;  %p2287_p4 = scmp.lt.s32.totalorder %s2285_s27, %s2278_s7 }
  0x36   : > { %p2282_p10 = pneg %p2281_p13  ;;  %p2288_p5 = por %p2287_p4, %p2286_p7 }
  0x38   : > { %p2289_p8 = pnand %p2288_p5, %p2282_p10 }
  0x3a   : > { %2292 = shalt.err (!%p2289_p8)
}
  0x3b   : > { %s3365_s6 = smov 128   ;;  %s3366_s11 = smov 8  }
  0x3c   : > { %2120 = dma.hbm_to_vmem [thread:$0]  (!%p2650_p9), %s2644_s13, 2048, %s2646_s15, %s2657_s10, %s3365_s6, %s3365_s6, %s3366_s11  }
  0x3d   : > { %s233_s12 = scalar_lea.vmem [#allocation8], %s2654_s30  ;;  %p249_p1 = scmp.lt.s32.totalorder %s2511_s25, 7 }
  0x3e   : > { %s241_s14 = sshll.u32 %s233_s12, 4  ;;  %p3392_p2 = scmp.ge.s32.totalorder %s2511_s25, 1  ;;  %s2752_s14 = int_to_ptr.vmem [resolvable:$true] %s241_s14 }
  0x3f   : > { %s1869_s8 = sadd.s32 4294967294, %s2511_s25   ;;  %s39_s9 = sadd.s32 1, %s2507_s24 }
  0x40   : > { %p2692_p7 = pnand %p3392_p2, %p249_p1  ;;  %s46_s27 = sadd.s32 1, %s2491_s20 }
  0x41   : > { %s3433_s9 = smov (!%p2610_p0, %s39_s9), %s2507_s24  ;;  %p53_p10 = scmp.ne.s32.totalorder %s2491_s20, %s2487_s19 }
  0x42   : > { %s3393_s7 = scalar_select %p2692_p7, 1, 0 }
  0x43   : > { %p59_p3 = scmp.ne.s32.totalorder %s2487_s19, %s2483_s18  ;;  %p41_p6 = scmp.ge.s32.totalorder %s3433_s9, 2 }
  0x44   : > { %p135_p11 = scmp.eq.s32.totalorder %s2607_s26, 5  ;;  %p3394_p13 = scmp.eq.s32.totalorder %s2511_s25, 0 }
  0x45   : > { %p3396_p5 = scmp.eq.s32.totalorder %s2607_s26, 0  ;;  %s3435_s9 = smov (%p41_p6, %s3433_s9), 0 }
  0x46   : > { %p2709_p4 = por %p3394_p13, %p53_p10  ;;  %3398 = sst [smem:[#allocation23_spill]] %s3435_s9 }
  0x47   : > { %p2715_p8 = por %p3396_p5, %p59_p3  ;;  %p2721_p0 = por %p135_p11, %p53_p10 }
  0x48   : > { %p141_p1 = scmp.eq.s32.totalorder %s1869_s8, 5  ;;  %s43_s30 = ssub.s32 %s2507_s24, %s3435_s9 }
  0x49   : > { %s3397_s15 = scalar_select %p2715_p8, 1, 0 }
  0x4a   : > { %s3399_s28 = scalar_select %p2721_p0, 1, 0 }
  0x4b   : > { %s187_s12 = sand.u32 1, %s2491_s20   ;;  %p44_p2 = scmp.eq.s32.totalorder %s43_s30, 0 }
  0x4c   : > { %p2728_p13 = por %p141_p1, %p59_p3  ;;  %s1872_s11 = sshll.u32 %s187_s12, 7 }
  0x4d   : > { %s2733_s1 = scalar_select %p44_p2, %s2491_s20, %s46_s27  }
  0x4e   : > { %s3400_s6 = scalar_select %p2728_p13, 1, 0 }
  0x4f   : > { %3401 = sst [smem:[#allocation24_spill]] %s2733_s1  ;;  %s1897_s17 = sshll.u32 %s2507_s24, 11 }
  0x50   : > { %s2739_s3 = scalar_lea.hbm %s3355_s0, %s1897_s17  ;;  %s191_s8 = scalar_lea.vmem [#allocation3], %s1872_s11 }
  0x51   : > { %s198_s9 = sshll.u32 %s191_s8, 4  ;;  %p3402_p10 = scmp.lt.s32.totalorder %s2511_s25, 6  ;;  %s2741_s9 = int_to_ptr.vmem [resolvable:$true] %s198_s9 }
  0x52   : > { %s1900_s27 = sshll.u32 %s2503_s23, 13  ;;  %s2759_s11 = scalar_lea.sflag [#allocation4], %s187_s12 }
  0x53   : > { %p2747_p3 = pnand %p3402_p10, %p2709_p4  ;;  %s2757_s18 = scalar_lea.hbm %s3357_s2, %s1900_s27 }
  0x54   : > { %s2293_s8 = scalar_lea.hbm %s2739_s3, 2048  ;;  %s2298_s23 = scalar_lea.hbm %s3355_s0, 4096 }
  0x55   : > { %p2294_p6 = scmp.ne.s32.totalorder %s2739_s3, %s2293_s8  ;;  %p2295_p11 = pneg %p2747_p3 }
  0x56   : > { %p2299_p1 = scmp.lt.u32.totalorder %s2739_s3, %s3355_s0  ;;  %p2300_p2 = scmp.lt.u32.totalorder %s2298_s23, %s2293_s8 }
  0x57   : > { %p2296_p4 = pnand %p2295_p11, %p2294_p6  ;;  %p2302_p12 = scmp.lt.u32.totalorder %s2293_s8, %s2739_s3 }
  0x58   : > { %p2301_p10 = por %p2300_p2, %p2299_p1 }
  0x59   : > { %p2297_p5 = pneg %p2296_p4 }
  0x5a   : > { %p2303_p13 = por %p2302_p12, %p2301_p10 }
  0x5c   : > { %p2304_p0 = pnand %p2303_p13, %p2297_p5 }
  0x5e   : > { %2307 = shalt.err (!%p2304_p0)
}
  0x5f   : > { %s2308_s12 = scalar_lea.vmem %s2741_s9, 2048  ;;  %s2516_s24 = smov [#allocation3]  }
  0x60   : > { %p2309_p6 = scmp.ne.s32.totalorder %s2741_s9, %s2308_s12  ;;  %s2313_s27 = sshll.u32 %s2516_s24, 4  ;;  %s2314_s27 = int_to_ptr.vmem [resolvable:$false] %s2313_s27 }
  0x61   : > { %s2315_s1 = scalar_lea.vmem %s2314_s27, 4096  ;;  %p2316_p7 = scmp.lt.s32.totalorder %s2741_s9, %s2314_s27 }
  0x62   : > { %p2311_p4 = pnand %p2309_p6, %p2295_p11  ;;  %p2317_p1 = scmp.lt.s32.totalorder %s2315_s1, %s2308_s12 }
  0x64   : > { %p2312_p8 = pneg %p2311_p4  ;;  %p2318_p2 = por %p2317_p1, %p2316_p7 }
  0x66   : > { %p2319_p12 = pnand %p2318_p2, %p2312_p8 }
  0x68   : > { %2322 = shalt.err (!%p2319_p12)
}
  0x69   : > { %s3404_s20 = smov 8   ;;  %s3405_s23 = smov 128  }
  0x6a   : > { %2117 = dma.hbm_to_vmem [thread:$0]  (!%p2747_p3), %s2739_s3, 2048, %s2741_s9, %s2759_s11, %s3405_s23, %s3405_s23, %s3404_s20  }
  0x6b   : > { %s2323_s4 = scalar_lea.hbm %s2757_s18, 8192  ;;  %p3406_p7 = pneg %p2650_p9 }
  0x6c   : > { %p2324_p0 = scmp.ne.s32.totalorder %s2757_s18, %s2323_s4  ;;  %s2328_s8 = scalar_lea.hbm %s3357_s2, 24576 }
  0x6d   : > { %p2329_p11 = scmp.lt.u32.totalorder %s2757_s18, %s3357_s2  ;;  %p2330_p5 = scmp.lt.u32.totalorder %s2328_s8, %s2323_s4 }
  0x6e   : > { %p2326_p8 = pnand %p2324_p0, %p3406_p7  ;;  %p2332_p6 = scmp.lt.u32.totalorder %s2323_s4, %s2757_s18 }
  0x6f   : > { %p2331_p10 = por %p2330_p5, %p2329_p11 }
  0x70   : > { %p2327_p13 = pneg %p2326_p8 }
  0x71   : > { %p2333_p4 = por %p2332_p6, %p2331_p10 }
  0x73   : > { %p2334_p1 = pnand %p2333_p4, %p2327_p13 }
  0x75   : > { %2337 = shalt.err (!%p2334_p1)
}
  0x76   : > { %s2338_s3 = scalar_lea.vmem %s2752_s14, 8192  ;;  %p3407_p2 = pmov %p3406_p7 }
  0x77   : > { %p2339_p3 = scmp.ne.s32.totalorder %s2752_s14, %s2338_s3  ;;  %s2517_s9 = smov [#allocation8]  }
  0x78   : > { %s2343_s11 = sshll.u32 %s2517_s9, 4  ;;  %s2344_s11 = int_to_ptr.vmem [resolvable:$false] %s2343_s11 }
  0x79   : > { %p2341_p12 = pnand %p2339_p3, %p3407_p2  ;;  %s2345_s24 = scalar_lea.vmem %s2344_s11, 16384 }
  0x7a   : > { %p2346_p7 = scmp.lt.s32.totalorder %s2752_s14, %s2344_s11  ;;  %p2347_p8 = scmp.lt.s32.totalorder %s2345_s24, %s2338_s3 }
  0x7b   : > { %p2342_p0 = pneg %p2341_p12 }
  0x7c   : > { %p2348_p11 = por %p2347_p8, %p2346_p7 }
  0x7e   : > { %p2349_p5 = pnand %p2348_p11, %p2342_p0 }
  0x80   : > { %2352 = shalt.err (!%p2349_p5)
}
  0x81   : > { %s2518_s27 = smov 512   ;;  %s2519_s1 = smov 32  }
  0x82   : > { %2123 = dma.hbm_to_vmem [thread:$0]  (!%p2650_p9), %s2757_s18, 8192, %s2752_s14, %s2657_s10, %s2518_s27, %s2518_s27, %s2519_s1  }
  0x83   : > { %p3408_p13 = scmp.ne.s32.totalorder %s3393_s7, 0 }
  0x84   : > { %s2817_s20 = sand.u32 (!%p3408_p13), 1, %s2487_s19   ;;  %p3409_p10 = scmp.ne.s32.totalorder (!%p3408_p13), %s3397_s15, 0 }
  0x85   : > { %253 = sbr.rel (%p3408_p13) target bundleno = 855 (0x357), region = 32  ;;  %s1883_s23 = sshll.u32 (!%p3408_p13), %s2817_s20, 7 }
  0x86   : > { %s256_s4 = scalar_lea.sflag (!%p3408_p13), [#allocation4], %s2817_s20  ;;  %s2821_s17 = scalar_lea.vmem (!%p3408_p13), [#allocation3], %s1883_s23 }
  0x8c   : > { %2454 = dma.done.wait (%p3409_p10), %s256_s4, 2048  }
  0x8d   : > { %2456 = vsyncadd (%p3409_p10), %s256_s4, 4294965248  ;;  %s264_s29 = sand.u32 1, %s2607_s26   ;;  %s266_s10 = sand.u32 1, %s2475_s16  }
  0x8e   : > { %s1884_s14 = sshll.u32 %s266_s10, 7  ;;  %s265_s7 = scalar_lea.sflag [#allocation7], %s264_s29 }
  0x8f   : > { %s2829_s18 = scalar_lea.vmem [#allocation6], %s1884_s14  ;;  %p3410_p9 = scmp.ne.s32.totalorder %s3388_s5, 0 }
  0x91   : > { %2458 = dma.done.wait (%p3410_p9), %s265_s7, 10240  }
  0x92   : > { %2460 = vsyncadd (%p3410_p9), %s265_s7, 4294957056  ;;  %s1885_s30 = sshll.u32 %s266_s10, 9  ;;  %s2102_s8 = smul.u32 384, %s2817_s20 }
  0x93   : > { %s2836_s13 = scalar_lea.vmem [#allocation8], %s1885_s30  ;;  %s2840_s12 = scalar_lea.vmem [#allocation10], %s1883_s23 }
  0x94   : > { %s2838_s15 = scalar_lea.vmem [#allocation9], %s2102_s8  ;;  %p1887_p6 = scmp.ne.s32.totalorder %s2495_s21, 0 }
  0x95   : > { %v2520_v0 = vmov (!%p1887_p6), 0.0  }
  0x96   : > { %325 = sbr.rel (%p1887_p6) target bundleno = 182 (0xb6), region = 48  ;;  %326 = vst [vmem:[#allocation2] sm:$0xff] (!%p1887_p6), %v2520_v0  ;;  %327 = vst [vmem:[#allocation2 + $0x8] sm:$0xff] (!%p1887_p6), %v2520_v0 }
  0x97   : > { %328 = vst [vmem:[#allocation2 + $0x10] sm:$0xff] (!%p1887_p6), %v2520_v0  ;;  %329 = vst [vmem:[#allocation2 + $0x18] sm:$0xff] (!%p1887_p6), %v2520_v0 }
  0x98   : > { %330 = vst [vmem:[#allocation2 + $0x20] sm:$0xff] (!%p1887_p6), %v2520_v0  ;;  %331 = vst [vmem:[#allocation2 + $0x28] sm:$0xff] (!%p1887_p6), %v2520_v0 }
  0x99   : > { %332 = vst [vmem:[#allocation2 + $0x30] sm:$0xff] (!%p1887_p6), %v2520_v0  ;;  %333 = vst [vmem:[#allocation2 + $0x38] sm:$0xff] (!%p1887_p6), %v2520_v0 }
  0x9a   : > { %334 = vst [vmem:[#allocation2 + $0x40] sm:$0xff] (!%p1887_p6), %v2520_v0  ;;  %335 = vst [vmem:[#allocation2 + $0x48] sm:$0xff] (!%p1887_p6), %v2520_v0 }
  0x9b   : > { %336 = vst [vmem:[#allocation2 + $0x50] sm:$0xff] (!%p1887_p6), %v2520_v0  ;;  %337 = vst [vmem:[#allocation2 + $0x58] sm:$0xff] (!%p1887_p6), %v2520_v0 }
  0x9c   : > { %338 = vst [vmem:[#allocation2 + $0x60] sm:$0xff] (!%p1887_p6), %v2520_v0  ;;  %339 = vst [vmem:[#allocation2 + $0x68] sm:$0xff] (!%p1887_p6), %v2520_v0 }
  0x9d   : > { %340 = vst [vmem:[#allocation2 + $0x70] sm:$0xff] %v2520_v0  ;;  %341 = vst [vmem:[#allocation2 + $0x78] sm:$0xff] %v2520_v0 }
  0x9e   : > { %342 = vst [vmem:[#allocation2 + $0x80] sm:$0xff] %v2520_v0  ;;  %343 = vst [vmem:[#allocation2 + $0x88] sm:$0xff] %v2520_v0 }
  0x9f   : > { %344 = vst [vmem:[#allocation2 + $0x90] sm:$0xff] %v2520_v0  ;;  %345 = vst [vmem:[#allocation2 + $0x98] sm:$0xff] %v2520_v0 }
  0xa0   : > { %346 = vst [vmem:[#allocation2 + $0xa0] sm:$0xff] %v2520_v0  ;;  %347 = vst [vmem:[#allocation2 + $0xa8] sm:$0xff] %v2520_v0 }
  0xa1   : > { %348 = vst [vmem:[#allocation2 + $0xb0] sm:$0xff] %v2520_v0  ;;  %349 = vst [vmem:[#allocation2 + $0xb8] sm:$0xff] %v2520_v0 }
  0xa2   : > { %350 = vst [vmem:[#allocation2 + $0xc0] sm:$0xff] %v2520_v0  ;;  %351 = vst [vmem:[#allocation2 + $0xc8] sm:$0xff] %v2520_v0 }
  0xa3   : > { %352 = vst [vmem:[#allocation2 + $0xd0] sm:$0xff] %v2520_v0  ;;  %353 = vst [vmem:[#allocation2 + $0xd8] sm:$0xff] %v2520_v0 }
  0xa4   : > { %354 = vst [vmem:[#allocation2 + $0xe0] sm:$0xff] %v2520_v0  ;;  %355 = vst [vmem:[#allocation2 + $0xe8] sm:$0xff] %v2520_v0 }
  0xa5   : > { %356 = vst [vmem:[#allocation2 + $0xf0] sm:$0xff] %v2520_v0  ;;  %357 = vst [vmem:[#allocation2 + $0xf8] sm:$0xff] %v2520_v0 }
  0xa6   : > { %358 = vst [vmem:[#allocation2 + $0x100] sm:$0xff] %v2520_v0  ;;  %359 = vst [vmem:[#allocation2 + $0x108] sm:$0xff] %v2520_v0 }
  0xa7   : > { %360 = vst [vmem:[#allocation2 + $0x110] sm:$0xff] %v2520_v0  ;;  %361 = vst [vmem:[#allocation2 + $0x118] sm:$0xff] %v2520_v0 }
  0xa8   : > { %362 = vst [vmem:[#allocation2 + $0x120] sm:$0xff] %v2520_v0  ;;  %363 = vst [vmem:[#allocation2 + $0x128] sm:$0xff] %v2520_v0 }
  0xa9   : > { %364 = vst [vmem:[#allocation2 + $0x130] sm:$0xff] %v2520_v0  ;;  %365 = vst [vmem:[#allocation2 + $0x138] sm:$0xff] %v2520_v0 }
  0xaa   : > { %366 = vst [vmem:[#allocation2 + $0x140] sm:$0xff] %v2520_v0  ;;  %367 = vst [vmem:[#allocation2 + $0x148] sm:$0xff] %v2520_v0 }
  0xab   : > { %368 = vst [vmem:[#allocation2 + $0x150] sm:$0xff] %v2520_v0  ;;  %369 = vst [vmem:[#allocation2 + $0x158] sm:$0xff] %v2520_v0 }
  0xac   : > { %370 = vst [vmem:[#allocation2 + $0x160] sm:$0xff] %v2520_v0  ;;  %371 = vst [vmem:[#allocation2 + $0x168] sm:$0xff] %v2520_v0 }
  0xad   : > { %372 = vst [vmem:[#allocation2 + $0x170] sm:$0xff] %v2520_v0  ;;  %373 = vst [vmem:[#allocation2 + $0x178] sm:$0xff] %v2520_v0 }
  0xae   : > { %374 = vst [vmem:[#allocation2 + $0x180] sm:$0xff] %v2520_v0  ;;  %375 = vst [vmem:[#allocation2 + $0x188] sm:$0xff] %v2520_v0 }
  0xaf   : > { %376 = vst [vmem:[#allocation2 + $0x190] sm:$0xff] %v2520_v0  ;;  %377 = vst [vmem:[#allocation2 + $0x198] sm:$0xff] %v2520_v0 }
  0xb0   : > { %378 = vst [vmem:[#allocation2 + $0x1a0] sm:$0xff] %v2520_v0  ;;  %379 = vst [vmem:[#allocation2 + $0x1a8] sm:$0xff] %v2520_v0 }
  0xb1   : > { %380 = vst [vmem:[#allocation2 + $0x1b0] sm:$0xff] %v2520_v0  ;;  %381 = vst [vmem:[#allocation2 + $0x1b8] sm:$0xff] %v2520_v0 }
  0xb2   : > { %382 = vst [vmem:[#allocation2 + $0x1c0] sm:$0xff] %v2520_v0  ;;  %383 = vst [vmem:[#allocation2 + $0x1c8] sm:$0xff] %v2520_v0 }
  0xb3   : > { %384 = vst [vmem:[#allocation2 + $0x1d0] sm:$0xff] %v2520_v0  ;;  %385 = vst [vmem:[#allocation2 + $0x1d8] sm:$0xff] %v2520_v0 }
  0xb4   : > { %386 = vst [vmem:[#allocation2 + $0x1e0] sm:$0xff] %v2520_v0  ;;  %387 = vst [vmem:[#allocation2 + $0x1e8] sm:$0xff] %v2520_v0 }
  0xb5   : > { %388 = vst [vmem:[#allocation2 + $0x1f0] sm:$0xff] %v2520_v0  ;;  %389 = vst [vmem:[#allocation2 + $0x1f8] sm:$0xff] %v2520_v0 }
  0xb6 PF: > { %v422_v1 = vld [vmem:[%s2829_s18] sm:$0xff]  ;;  %v423_v2 = vld [vmem:[%s2829_s18 + $0x8] sm:$0xff]  ;;  %v424_v3 = vld [vmem:[%s2829_s18 + $0x10] sm:$0xff]  ;;  %vm706_vm0 = vcmask 130112   ;;  %vm713_vm1 = vcmask 195712   ;;  %vm720_vm2 = vcmask 261312  }
  0xb7   : > { %v1990_v4 = vpack.c.bf16 %v423_v2, %v422_v1  ;;  %v425_v5 = vld [vmem:[%s2829_s18 + $0x18] sm:$0xff]  ;;  %v488_v6 = vmul.f32 %v424_v3, %v424_v3  ;;  %v486_v7 = vmul.f32 %v422_v1, %v422_v1  ;;  %v487_v10 = vmul.f32 %v423_v2, %v423_v2  ;;  %v390_v11 = vld [vmem:[%s2821_s17] sm:$0xff]  ;;  %v427_v13 = vld [vmem:[%s2829_s18 + $0x28] sm:$0xff]  ;;  %p1888_p4 = scmp.ne.s32.totalorder %s2495_s21, 2 }
  0xb8   : > { %v1994_v8 = vpack.c.bf16 %v425_v5, %v424_v3  ;;  %v489_v9 = vmul.f32 %v425_v5, %v425_v5  ;;  %v426_v12 = vld [vmem:[%s2829_s18 + $0x20] sm:$0xff]  ;;  %v406_v14 = vmul.f32 1.25, %v390_v11  ;;  %v491_v15 = vmul.f32 %v427_v13, %v427_v13  ;;  %v429_v18 = vld [vmem:[%s2829_s18 + $0x38] sm:$0xff]  ;;  %v428_v19 = vld [vmem:[%s2829_s18 + $0x30] sm:$0xff] }
  0xb9   : > { %1991 = vmatprep.subr.bf16.mxu0 %v1990_v4  ;;  %506 = vadd.xlane.f32.xlu1 %v488_v6  ;;  %v490_v16 = vmul.f32 %v426_v12, %v426_v12  ;;  %v1998_v17 = vpack.c.bf16 %v427_v13, %v426_v12  ;;  %v493_v20 = vmul.f32 %v429_v18, %v429_v18  ;;  %v431_v22 = vld [vmem:[%s2829_s18 + $0x48] sm:$0xff]  ;;  %v430_v23 = vld [vmem:[%s2829_s18 + $0x40] sm:$0xff]  ;;  %v433_v27 = vld [vmem:[%s2829_s18 + $0x58] sm:$0xff]  ;;  %vm727_vm3 = vcmask 326912  }
  0xba   : > { %1993 = vmatpush3.bf16.xpose.msra.mxu0 %v1990_v4  ;;  %502 = vadd.xlane.f32.xlu0 %v486_v7  ;;  %v492_v21 = vmul.f32 %v428_v19, %v428_v19  ;;  %v495_v24 = vmul.f32 %v431_v22, %v431_v22  ;;  %v494_v25 = vmul.f32 %v430_v23, %v430_v23  ;;  %v432_v28 = vld [vmem:[%s2829_s18 + $0x50] sm:$0xff]  ;;  %v435_v31 = vld [vmem:[%s2829_s18 + $0x68] sm:$0xff]  ;;  %v434_v32 = vld [vmem:[%s2829_s18 + $0x60] sm:$0xff]  ;;  %vm734_vm4 = vcmask 392512  }
  0xbb   : > { %1995 = vmatprep.subr.bf16.mxu0 %v1994_v8  ;;  %1966 = vmatprep.mubr.f32.mxu0 %v406_v14  ;;  %v2002_v26 = vpack.c.bf16 %v429_v18, %v428_v19  ;;  %v497_v29 = vmul.f32 %v433_v27, %v433_v27  ;;  %v496_v30 = vmul.f32 %v432_v28, %v432_v28  ;;  %v437_v36 = vld [vmem:[%s2829_s18 + $0x78] sm:$0xff]  ;;  %v391_v37 = vld [vmem:[%s2821_s17 + $0x8] sm:$0xff]  ;;  %v436_v38 = vld [vmem:[%s2829_s18 + $0x70] sm:$0xff]  ;;  %vm741_vm5 = vcmask 458112  }
  0xbc   : > { %v499_v33 = vmul.f32 %v435_v31, %v435_v31  ;;  %v498_v34 = vmul.f32 %v434_v32, %v434_v32  ;;  %v2006_v35 = vpack.c.bf16 %v431_v22, %v430_v23  ;;  %v501_v39 = vmul.f32 %v437_v36, %v437_v36  ;;  %v393_v42 = vld [vmem:[%s2821_s17 + $0x18] sm:$0xff]  ;;  %v392_v43 = vld [vmem:[%s2821_s17 + $0x10] sm:$0xff]  ;;  %v395_v49 = vld [vmem:[%s2821_s17 + $0x28] sm:$0xff] }
  0xbd   : > { %508 = vadd.xlane.f32.xlu1 %v489_v9  ;;  %v500_v40 = vmul.f32 %v436_v38, %v436_v38  ;;  %v2925_v41 = vmul.f32 1.25, %v391_v37  ;;  %v438_v45 = vmul.f32 %v406_v14, %v406_v14  ;;  %v2010_v46 = vpack.c.bf16 %v433_v27, %v432_v28  ;;  %v394_v50 = vld [vmem:[%s2821_s17 + $0x20] sm:$0xff]  ;;  %v397_v55 = vld [vmem:[%s2821_s17 + $0x38] sm:$0xff]  ;;  %v396_v56 = vld [vmem:[%s2821_s17 + $0x30] sm:$0xff] }
  0xbe   : > { %504 = vadd.xlane.f32.xlu0 %v487_v10  ;;  %v2931_v47 = vmul.f32 1.25, %v393_v42  ;;  %v2933_v48 = vmul.f32 1.25, %v392_v43  ;;  %v411_v53 = vmul.f32 1.25, %v395_v49  ;;  %v410_v54 = vmul.f32 1.25, %v394_v50  ;;  %v399_v62 = vld [vmem:[%s2821_s17 + $0x48] sm:$0xff]  ;;  %v398_v63 = vld [vmem:[%s2821_s17 + $0x40] sm:$0xff] }
  0xbf   : > { %v439_v44 = vmul.f32 %v2925_v41, %v2925_v41  ;;  %v2014_v59 = vpack.c.bf16 %v435_v31, %v434_v32  ;;  %v413_v60 = vmul.f32 1.25, %v397_v55  ;;  %v412_v61 = vmul.f32 1.25, %v396_v56  ;;  %v401_v4 = vld [vmem:[%s2821_s17 + $0x58] sm:$0xff]  ;;  %v400_v5 = vld [vmem:[%s2821_s17 + $0x50] sm:$0xff]  ;;  %v403_v11 = vld [vmem:[%s2821_s17 + $0x68] sm:$0xff] }
  0xc0   : > { %v441_v51 = vmul.f32 %v2931_v47, %v2931_v47  ;;  %v440_v52 = vmul.f32 %v2933_v48, %v2933_v48  ;;  %v443_v57 = vmul.f32 %v411_v53, %v411_v53  ;;  %v442_v58 = vmul.f32 %v410_v54, %v410_v54  ;;  %v402_v12 = vld [vmem:[%s2821_s17 + $0x60] sm:$0xff]  ;;  %v404_v18 = vld [vmem:[%s2821_s17 + $0x70] sm:$0xff]  ;;  %v1018_v31 = vld [vmem:[%s2836_s13 + $0x38] sm:$0xff] }
  0xc1   : > { %512 = vadd.xlane.f32.xlu1 %v491_v15  ;;  %v445_v0 = vmul.f32 %v413_v60, %v413_v60  ;;  %v444_v1 = vmul.f32 %v412_v61, %v412_v61  ;;  %v2945_v2 = vmul.f32 1.25, %v399_v62  ;;  %v414_v3 = vmul.f32 1.25, %v398_v63  ;;  %v1011_v27 = vld [vmem:[%s2836_s13] sm:$0xff]  ;;  %v1022_v43 = vld [vmem:[%s2836_s13 + $0x58] sm:$0xff]  ;;  %v1028_v49 = vld [vmem:[%s2836_s13 + $0x88] sm:$0xff] }
  0xc2   : > { %1997 = vmatpush3.bf16.xpose.msra.mxu0 %v1994_v8  ;;  %510 = vadd.xlane.f32.xlu0 %v490_v16  ;;  %v2018_v8 = vpack.c.bf16 %v437_v36, %v436_v38  ;;  %v2951_v9 = vmul.f32 1.25, %v401_v4  ;;  %v416_v10 = vmul.f32 1.25, %v400_v5  ;;  %v419_v15 = vmul.f32 1.25, %v403_v11  ;;  %v1020_v36 = vld [vmem:[%s2836_s13 + $0x48] sm:$0xff]  ;;  %v1034_v55 = vld [vmem:[%s2836_s13 + $0xb8] sm:$0xff] }
  0xc3   : > { %1999 = vmatprep.subr.bf16.mxu0 %v1998_v17  ;;  %v447_v6 = vmul.f32 %v2945_v2, %v2945_v2  ;;  %v446_v7 = vmul.f32 %v414_v3, %v414_v3  ;;  %v418_v16 = vmul.f32 1.25, %v402_v12  ;;  %v420_v22 = vmul.f32 1.25, %v404_v18  ;;  %v1024_v38 = vld [vmem:[%s2836_s13 + $0x68] sm:$0xff]  ;;  %v1038_v63 = vld [vmem:[%s2836_s13 + $0xd8] sm:$0xff]  ;;  %v1045_v18 = vld [vmem:[%s2836_s13 + $0x110] sm:$0xff] }
  0xc4   : > { %v449_v13 = vmul.f32 %v2951_v9, %v2951_v9  ;;  %v448_v14 = vmul.f32 %v416_v10, %v416_v10  ;;  %v451_v19 = vmul.f32 %v419_v15, %v419_v15  ;;  %v1032_v50 = vld [vmem:[%s2836_s13 + $0xa8] sm:$0xff]  ;;  %v1046_v11 = vld [vmem:[%s2836_s13 + $0x118] sm:$0xff]  ;;  %vm748_vm6 = vcmask 523712  }
  0xc5   : > { %516 = vadd.xlane.f32.xlu1 %v493_v20  ;;  %v450_v20 = vmul.f32 %v418_v16, %v418_v16  ;;  %v1040_v62 = vld [vmem:[%s2836_s13 + $0xe8] sm:$0xff]  ;;  %vm755_vm7 = vcmask 589312   ;;  %vm762_vm8 = vcmask 654912   ;;  %vm769_vm9 = vcmask 720512  }
  0xc6   : > { %514 = vadd.xlane.f32.xlu0 %v492_v21  ;;  %vm776_vm10 = vcmask 786112   ;;  %vm783_vm11 = vcmask 851712   ;;  %vm790_vm12 = vcmask 917312   ;;  %vm797_vm13 = vcmask 982912  }
  0xc7   : > { %vm804_vm14 = vcmask 1048512  }
  0xc9   : > { %520 = vadd.xlane.f32.xlu1 %v495_v24  ;;  %v452_v24 = vmul.f32 %v420_v22, %v420_v22 }
  0xca   : > { %2001 = vmatpush3.bf16.xpose.msra.mxu0 %v1998_v17  ;;  %518 = vadd.xlane.f32.xlu0 %v494_v25  ;;  %v405_v17 = vld [vmem:[%s2821_s17 + $0x78] sm:$0xff]  ;;  %v1012_v25 = vld [vmem:[%s2836_s13 + $0x8] sm:$0xff] }
  0xcb   : > { %2003 = vmatprep.subr.bf16.mxu0 %v2002_v26  ;;  %v421_v21 = vmul.f32 1.25, %v405_v17 }
  0xcd   : > { %524 = vadd.xlane.f32.xlu1 %v497_v29  ;;  %v453_v23 = vmul.f32 %v421_v21, %v421_v21  ;;  %v1015_v29 = vld [vmem:[%s2836_s13 + $0x20] sm:$0xff] }
  0xce   : > { %522 = vadd.xlane.f32.xlu0 %v496_v30  ;;  %v1014_v30 = vld [vmem:[%s2836_s13 + $0x18] sm:$0xff]  ;;  %v2024_v32 = vpack.c.bf16 %v1015_v29, %v1011_v27 }
  0xcf   : > { %v1058_v27 = vld [vmem:[%s2836_s13 + $0x178] sm:$0xff] }
  0xd1   : > { %528 = vadd.xlane.f32.xlu1 %v499_v33  ;;  %v2968_v33 = vpack.c.bf16 %v1018_v31, %v1014_v30  ;;  %v1053_v30 = vld [vmem:[%s2836_s13 + $0x150] sm:$0xff] }
  0xd2   : > { %2005 = vmatpush3.bf16.xpose.msra.mxu0 %v2002_v26  ;;  %526 = vadd.xlane.f32.xlu0 %v498_v34  ;;  %v1016_v26 = vld [vmem:[%s2836_s13 + $0x28] sm:$0xff]  ;;  %v1013_v34 = vld [vmem:[%s2836_s13 + $0x10] sm:$0xff] }
  0xd3   : > { %2007 = vmatprep.subr.bf16.mxu0 %v2006_v35  ;;  %v2022_v28 = vpack.c.bf16 %v1016_v26, %v1012_v25  ;;  %v1051_v25 = vld [vmem:[%s2836_s13 + $0x140] sm:$0xff]  ;;  %v1057_v31 = vld [vmem:[%s2836_s13 + $0x170] sm:$0xff] }
  0xd4   : > { %v1055_v26 = vld [vmem:[%s2836_s13 + $0x160] sm:$0xff] }
  0xd5   : > { %532 = vadd.xlane.f32.xlu1 %v501_v39  ;;  %2023 = vmatprep.subr.bf16.mxu1 %v2022_v28  ;;  %v1019_v39 = vld [vmem:[%s2836_s13 + $0x40] sm:$0xff]  ;;  %v2044_v28 = vpack.c.bf16 %v1055_v26, %v1051_v25 }
  0xd6   : > { %530 = vadd.xlane.f32.xlu0 %v500_v40  ;;  %v1023_v40 = vld [vmem:[%s2836_s13 + $0x60] sm:$0xff]  ;;  %2025 = vmatpush1.bf16.msra.mxu1 %v2024_v32  ;;  %v3044_v32 = vpack.c.bf16 %v1057_v31, %v1053_v30 }
  0xd7   : > { %v2028_v42 = vpack.c.bf16 %v1023_v40, %v1019_v39  ;;  %v1059_v39 = vld [vmem:[%s2836_s13 + $0x180] sm:$0xff] }
  0xd8   : > { %v1063_v40 = vld [vmem:[%s2836_s13 + $0x1a0] sm:$0xff] }
  0xd9   : > { %456 = vadd.xlane.f32.xlu1 %v439_v44  ;;  %v1026_v44 = vld [vmem:[%s2836_s13 + $0x78] sm:$0xff] }
  0xda   : > { %2009 = vmatpush3.bf16.xpose.msra.mxu0 %v2006_v35  ;;  %454 = vadd.xlane.f32.xlu0 %v438_v45  ;;  %v1017_v35 = vld [vmem:[%s2836_s13 + $0x30] sm:$0xff] }
  0xdb   : > { %2011 = vmatprep.subr.bf16.mxu0 %v2010_v46  ;;  %v2973_v37 = vpack.c.bf16 %v1017_v35, %v1013_v34  ;;  %v1021_v45 = vld [vmem:[%s2836_s13 + $0x50] sm:$0xff]  ;;  %v1060_v34 = vld [vmem:[%s2836_s13 + $0x188] sm:$0xff] }
  0xdc   : > { %v1064_v35 = vld [vmem:[%s2836_s13 + $0x1a8] sm:$0xff] }
  0xdd   : > { %460 = vadd.xlane.f32.xlu1 %v441_v51  ;;  %v1030_v51 = vld [vmem:[%s2836_s13 + $0x98] sm:$0xff] }
  0xde   : > { %458 = vadd.xlane.f32.xlu0 %v440_v52  ;;  %v2030_v52 = vpack.c.bf16 %v1032_v50, %v1028_v49  ;;  %v1068_v49 = vld [vmem:[%s2836_s13 + $0x1c8] sm:$0xff] }
  0xdf   : > { %v1072_v50 = vld [vmem:[%s2836_s13 + $0x1e8] sm:$0xff] }
  0xe1   : > { %464 = vadd.xlane.f32.xlu1 %v443_v57  ;;  %v2998_v57 = vpack.c.bf16 %v1034_v55, %v1030_v51  ;;  %v1070_v51 = vld [vmem:[%s2836_s13 + $0x1d8] sm:$0xff] }
  0xe2   : > { %2013 = vmatpush3.bf16.xpose.msra.mxu0 %v2010_v46  ;;  %462 = vadd.xlane.f32.xlu0 %v442_v58  ;;  %v2983_v46 = vpack.c.bf16 %v1026_v44, %v1022_v43  ;;  %v1029_v58 = vld [vmem:[%s2836_s13 + $0x90] sm:$0xff]  ;;  %v1074_v55 = vld [vmem:[%s2836_s13 + $0x1f8] sm:$0xff] }
  0xe3   : > { %2015 = vmatprep.subr.bf16.mxu0 %v2014_v59  ;;  %v1061_v44 = vld [vmem:[%s2836_s13 + $0x190] sm:$0xff] }
  0xe5   : > { %468 = vadd.xlane.f32.xlu1 %v445_v0 }
  0xe6   : > { %466 = vadd.xlane.f32.xlu0 %v444_v1  ;;  %v1035_v1 = vld [vmem:[%s2836_s13 + $0xc0] sm:$0xff] }
  0xe9   : > { %472 = vadd.xlane.f32.xlu1 %v447_v6  ;;  %v1037_v6 = vld [vmem:[%s2836_s13 + $0xd0] sm:$0xff] }
  0xea   : > { %2017 = vmatpush3.bf16.xpose.msra.mxu0 %v2014_v59  ;;  %470 = vadd.xlane.f32.xlu0 %v446_v7  ;;  %v1033_v59 = vld [vmem:[%s2836_s13 + $0xb0] sm:$0xff] }
  0xeb   : > { %2019 = vmatprep.subr.bf16.mxu0 %v2018_v8  ;;  %v1041_v7 = vld [vmem:[%s2836_s13 + $0xf0] sm:$0xff] }
  0xed   : > { %476 = vadd.xlane.f32.xlu1 %v449_v13  ;;  %v1043_v13 = vld [vmem:[%s2836_s13 + $0x100] sm:$0xff] }
  0xee   : > { %474 = vadd.xlane.f32.xlu0 %v448_v14  ;;  %v1047_v14 = vld [vmem:[%s2836_s13 + $0x120] sm:$0xff] }
  0xf1   : > { %480 = vadd.xlane.f32.xlu1 %v451_v19  ;;  %v1049_v19 = vld [vmem:[%s2836_s13 + $0x130] sm:$0xff] }
  0xf2   : > { %2021 = vmatpush3.bf16.xpose.msra.mxu0 %v2018_v8  ;;  %478 = vadd.xlane.f32.xlu0 %v450_v20  ;;  %v3016_v8 = vpack.c.bf16 %v1041_v7, %v1037_v6  ;;  %v3030_v20 = vpack.c.bf16 %v1049_v19, %v1045_v18 }
  0xf3   : > { %2055 = vmatprep.subr.bf16.mxu0 %v2968_v33 }
  0xf5   : > { %484 = vadd.xlane.f32.xlu1 %v453_v23  ;;  %v1054_v23 = vld [vmem:[%s2836_s13 + $0x158] sm:$0xff] }
  0xf6   : > { %482 = vadd.xlane.f32.xlu0 %v452_v24  ;;  %v3040_v29 = vpack.c.bf16 %v1058_v27, %v1054_v23 }
  0xf9   : > { %1967 = vmatmul.mubr.f32.vlgmr.msra.gmra.mrb[0].mxu0 %v2925_v41  ;;  %v2026_v41 = vpack.c.bf16 %v1024_v38, %v1020_v36  ;;  %v1062_v36 = vld [vmem:[%s2836_s13 + $0x198] sm:$0xff]  ;;  %v2046_v38 = vpack.c.bf16 %v1064_v35, %v1060_v34 }
  0xfa   : > { %1969 = vmatprep.mubr.f32.mxu0 %v2933_v48  ;;  %2057 = vmatpush1.bf16.msra.mxu0 %v2973_v37 }
  0xfb   : > { %2027 = vmatprep.subr.bf16.mxu1 %v2026_v41  ;;  %2059 = vmatprep.subr.bf16.mxu0 %v2983_v46  ;;  %v1066_v41 = vld [vmem:[%s2836_s13 + $0x1b8] sm:$0xff] }
  0xfc   : > { %2029 = vmatpush1.bf16.msra.mxu1 %v2028_v42  ;;  %v2048_v42 = vpack.c.bf16 %v1063_v40, %v1059_v39  ;;  %v3054_v43 = vpack.c.bf16 %v1066_v41, %v1062_v36 }
  0xfd   : > { %1970 = vmatmul.mubr.f32.gmra.mrb[2].mxu0 %v2931_v47  ;;  %v1025_v47 = vld [vmem:[%s2836_s13 + $0x70] sm:$0xff]  ;;  %2031 = vmatprep.subr.bf16.mxu1 %v2030_v52  ;;  %v2050_v52 = vpack.c.bf16 %v1072_v50, %v1068_v49 }
  0xfe   : > { %1972 = vmatprep.mubr.f32.mxu0 %v410_v54  ;;  %v2987_v48 = vpack.c.bf16 %v1025_v47, %v1021_v45  ;;  %v1031_v54 = vld [vmem:[%s2836_s13 + $0xa0] sm:$0xff]  ;;  %v1065_v45 = vld [vmem:[%s2836_s13 + $0x1b0] sm:$0xff] }
  0xff   : > { %v3058_v47 = vpack.c.bf16 %v1065_v45, %v1061_v44 }
 0x100   : > { %2061 = vmatpush1.bf16.msra.mxu0 %v2987_v48 }
 0x101   : > { %1973 = vmatmul.mubr.f32.gmra.mrb[4].mxu0 %v411_v53  ;;  %v1027_v53 = vld [vmem:[%s2836_s13 + $0x80] sm:$0xff]  ;;  %2063 = vmatprep.subr.bf16.mxu0 %v2998_v57 }
 0x102   : > { %1975 = vmatprep.mubr.f32.mxu0 %v412_v61  ;;  %v2032_v56 = vpack.c.bf16 %v1031_v54, %v1027_v53  ;;  %v1036_v61 = vld [vmem:[%s2836_s13 + $0xc8] sm:$0xff]  ;;  %v1067_v53 = vld [vmem:[%s2836_s13 + $0x1c0] sm:$0xff] }
 0x103   : > { %v2034_v0 = vpack.c.bf16 %v1040_v62, %v1036_v61  ;;  %v1071_v54 = vld [vmem:[%s2836_s13 + $0x1e0] sm:$0xff]  ;;  %v1073_v61 = vld [vmem:[%s2836_s13 + $0x1f0] sm:$0xff] }
 0x104   : > { %2033 = vmatpush1.bf16.msra.mxu1 %v2032_v56  ;;  %v2052_v56 = vpack.c.bf16 %v1071_v54, %v1067_v53 }
 0x105   : > { %1976 = vmatmul.mubr.f32.gmra.mrb[6].mxu0 %v413_v60  ;;  %v3002_v60 = vpack.c.bf16 %v1033_v59, %v1029_v58  ;;  %2035 = vmatprep.subr.bf16.mxu1 %v2034_v0  ;;  %v3068_v58 = vpack.c.bf16 %v1074_v55, %v1070_v51  ;;  %v1069_v59 = vld [vmem:[%s2836_s13 + $0x1d0] sm:$0xff]  ;;  %v695_v0 = vlaneseq }
 0x106   : > { %1978 = vmatprep.mubr.f32.mxu0 %v414_v3  ;;  %v1042_v3 = vld [vmem:[%s2836_s13 + $0xf8] sm:$0xff]  ;;  %v3072_v62 = vpack.c.bf16 %v1073_v61, %v1069_v59 }
 0x107   : > { %2065 = vmatpush1.bf16.msra.mxu0 %v3002_v60  ;;  %v3012_v5 = vpack.c.bf16 %v1042_v3, %v1038_v63  ;;  %v2521_v63 = vmov 0.0  }
 0x108   : > { %1139 = vmatprep.mubr.f32.mxu1 %v2521_v63 }
 0x109   : > { %1979 = vmatmul.mubr.f32.gmra.mrb[8].mxu0 %v2945_v2  ;;  %v1039_v2 = vld [vmem:[%s2836_s13 + $0xe0] sm:$0xff]  ;;  %2067 = vmatprep.subr.bf16.mxu0 %v3012_v5 }
 0x10a   : > { %1981 = vmatprep.mubr.f32.mxu0 %v416_v10  ;;  %v2036_v4 = vpack.c.bf16 %v1039_v2, %v1035_v1  ;;  %v1048_v10 = vld [vmem:[%s2836_s13 + $0x128] sm:$0xff]  ;;  %v3079_v1 = vand.u32 127, %v695_v0  ;;  %v3081_v2 = vshrl.u32 %v695_v0, 7 }
 0x10b   : > { %2069 = vmatpush1.bf16.msra.mxu0 %v3016_v8 }
 0x10c   : > { %2037 = vmatpush1.bf16.msra.mxu1 %v2036_v4  ;;  %v701_v3 = vadd.s32 4294967288, %v3079_v1  ;;  %v708_v6 = vadd.s32 4294967280, %v3079_v1  ;;  %v699_v7 = vsub.s32 %v3079_v1, %v3081_v2  ;;  %v736_v26 = vadd.s32 4294967248, %v3079_v1 }
 0x10d   : > { %1982 = vmatmul.mubr.f32.gmra.mrb[10].mxu0 %v2951_v9  ;;  %v1044_v9 = vld [vmem:[%s2836_s13 + $0x108] sm:$0xff]  ;;  %v743_v35 = vadd.s32 4294967240, %v3079_v1  ;;  %v750_v40 = vadd.s32 4294967232, %v3079_v1  ;;  %v757_v50 = vadd.s32 4294967224, %v3079_v1  ;;  %v764_v54 = vadd.s32 4294967216, %v3079_v1 }
 0x10e   : > { %1984 = vmatprep.mubr.f32.mxu0 %v418_v16  ;;  %v2038_v12 = vpack.c.bf16 %v1048_v10, %v1044_v9  ;;  %v2040_v16 = vpack.c.bf16 %v1047_v14, %v1043_v13  ;;  %v715_v10 = vadd.s32 4294967272, %v3079_v1  ;;  %v739_v36 = vsub.s32 %v736_v26, %v3081_v2 }
 0x10f   : > { %v746_v41 = vsub.s32 %v743_v35, %v3081_v2  ;;  %v753_v51 = vsub.s32 %v750_v40, %v3081_v2  ;;  %v760_v55 = vsub.s32 %v757_v50, %v3081_v2  ;;  %v799_v26 = vadd.s32 4294967176, %v3079_v1 }
 0x110   : > { %2039 = vmatprep.subr.bf16.mxu1 %v2038_v12 }
 0x111   : > { %1985 = vmatmul.mubr.f32.gmra.mrb[12].mxu0 %v419_v15  ;;  %v1050_v15 = vld [vmem:[%s2836_s13 + $0x138] sm:$0xff]  ;;  %2041 = vmatpush1.bf16.msra.mxu1 %v2040_v16  ;;  %v718_v16 = vsub.s32 %v715_v10, %v3081_v2 }
 0x112   : > { %1987 = vmatprep.mubr.f32.mxu0 %v420_v22  ;;  %v3026_v17 = vpack.c.bf16 %v1050_v15, %v1046_v11  ;;  %v1056_v22 = vld [vmem:[%s2836_s13 + $0x168] sm:$0xff]  ;;  %v711_v11 = vsub.s32 %v708_v6, %v3081_v2  ;;  %v722_v15 = vadd.s32 4294967264, %v3079_v1 }
 0x114   : > { %2071 = vmatprep.subr.bf16.mxu0 %v3026_v17  ;;  %v725_v23 = vsub.s32 %v722_v15, %v3081_v2 }
 0x115   : > { %1988 = vmatmul.mubr.f32.gmra.mrb[14].mxu0 %v421_v21  ;;  %v1052_v21 = vld [vmem:[%s2836_s13 + $0x148] sm:$0xff] }
 0x116   : > { %2073 = vmatpush1.bf16.msra.mxu0 %v3030_v20  ;;  %v2042_v24 = vpack.c.bf16 %v1056_v22, %v1052_v21  ;;  %1300 = vmatprep.mubr.f32.mxu0 %v2521_v63  ;;  %v729_v22 = vadd.s32 4294967256, %v3079_v1 }
 0x117   : > { %2075 = vmatprep.subr.bf16.mxu0 %v3040_v29 }
 0x118   : > { %2043 = vmatprep.subr.bf16.mxu1 %v2042_v24  ;;  %v732_v27 = vsub.s32 %v729_v22, %v3081_v2 }
 0x119   : > { %2045 = vmatpush1.bf16.msra.mxu1 %v2044_v28 }
 0x11a   : > { %2077 = vmatpush1.bf16.msra.mxu0 %v3044_v32  ;;  %2047 = vmatprep.subr.bf16.mxu1 %v2046_v38 }
 0x11b   : > { %2079 = vmatprep.subr.bf16.mxu0 %v3054_v43 }
 0x11d   : > { %2049 = vmatpush1.bf16.msra.mxu1 %v2048_v42 }
 0x11e   : > { %2081 = vmatpush1.bf16.msra.mxu0 %v3058_v47  ;;  %2051 = vmatprep.subr.bf16.mxu1 %v2050_v52 }
 0x11f   : > { %2083 = vmatprep.subr.bf16.mxu0 %v3068_v58 }
 0x121   : > { %2053 = vmatpush1.bf16.msra.mxu1 %v2052_v56 }
 0x122   : > { %2085 = vmatpush1.bf16.msra.mxu0 %v3072_v62  ;;  %2086 = vmatprep.subr.bf16.mxu1 %v2968_v33  ;;  %v704_v33 = vsub.s32 %v701_v3, %v3081_v2  ;;  %v771_v3 = vadd.s32 4294967208, %v3079_v1 }
 0x146   : > { %v507_v9 = vpop.xlane.xlu1 %506 }
 0x147   : > { %v503_v4 = vpop.xlane.xlu0 %502  ;;  %v712_v18 = vrot.slane %v507_v9, %v711_v11  ;;  %v774_v9 = vsub.s32 %v771_v3, %v3081_v2 }
 0x148   : > { %v700_v13 = vrot.slane %v503_v4, %v699_v7  ;;  %v767_v4 = vsub.s32 %v764_v54, %v3081_v2 }
 0x14a   : > { %v509_v19 = vpop.xlane.xlu1 %508 }
 0x14b   : > { %v505_v12 = vpop.xlane.xlu0 %504  ;;  %v719_v24 = vrot.slane %v509_v19, %v718_v16  ;;  %v792_v19 = vadd.s32 4294967184, %v3079_v1 }
 0x14c   : > { %v705_v14 = vrot.slane %v505_v12, %v704_v33  ;;  %v778_v33 = vadd.s32 4294967200, %v3079_v1 }
 0x14e   : > { %v707_v21 = vsel %vm706_vm0, %v705_v14, %v700_v13  ;;  %v513_v31 = vpop.xlane.xlu1 %512  ;;  %v785_v14 = vadd.s32 4294967192, %v3079_v1  ;;  %v781_v15 = vsub.s32 %v778_v33, %v3081_v2 }
 0x14f   : > { %v714_v25 = vsel %vm713_vm1, %v712_v18, %v707_v21  ;;  %v511_v28 = vpop.xlane.xlu0 %510  ;;  %v733_v38 = vrot.slane %v513_v31, %v732_v27  ;;  %v795_v27 = vsub.s32 %v792_v19, %v3081_v2  ;;  %v802_v31 = vsub.s32 %v799_v26, %v3081_v2 }
 0x150   : > { %v726_v30 = vrot.slane %v511_v28, %v725_v23  ;;  %v721_v34 = vsel %vm720_vm2, %v719_v24, %v714_v25  ;;  %v788_v21 = vsub.s32 %v785_v14, %v3081_v2 }
 0x152   : > { %v728_v39 = vsel %vm727_vm3, %v726_v30, %v721_v34  ;;  %v517_v45 = vpop.xlane.xlu1 %516 }
 0x153   : > { %v515_v42 = vpop.xlane.xlu0 %514  ;;  %v735_v49 = vsel %vm734_vm4, %v733_v38, %v728_v39  ;;  %v747_v52 = vrot.slane %v517_v45, %v746_v41 }
 0x154   : > { %v740_v44 = vrot.slane %v515_v42, %v739_v36 }
 0x156   : > { %v742_v53 = vsel %vm741_vm5, %v740_v44, %v735_v49  ;;  %v521_v61 = vpop.xlane.xlu1 %520 }
 0x157   : > { %v519_v56 = vpop.xlane.xlu0 %518  ;;  %v749_v0 = vsel %vm748_vm6, %v747_v52, %v742_v53  ;;  %v761_v6 = vrot.slane %v521_v61, %v760_v55 }
 0x158   : > { %v754_v59 = vrot.slane %v519_v56, %v753_v51 }
 0x15a   : > { %v756_v7 = vsel %vm755_vm7, %v754_v59, %v749_v0  ;;  %v525_v12 = vpop.xlane.xlu1 %524 }
 0x15b   : > { %v523_v10 = vpop.xlane.xlu0 %522  ;;  %v763_v13 = vsel %vm762_vm8, %v761_v6, %v756_v7  ;;  %v775_v16 = vrot.slane %v525_v12, %v774_v9 }
 0x15c   : > { %v768_v11 = vrot.slane %v523_v10, %v767_v4 }
 0x15e   : > { %v770_v18 = vsel %vm769_vm9, %v768_v11, %v763_v13  ;;  %v529_v24 = vpop.xlane.xlu1 %528 }
 0x15f   : > { %v527_v22 = vpop.xlane.xlu0 %526  ;;  %v777_v25 = vsel %vm776_vm10, %v775_v16, %v770_v18  ;;  %v789_v28 = vrot.slane %v529_v24, %v788_v21 }
 0x160   : > { %v782_v23 = vrot.slane %v527_v22, %v781_v15 }
 0x162   : > { %v784_v30 = vsel %vm783_vm11, %v782_v23, %v777_v25  ;;  %v533_v36 = vpop.xlane.xlu1 %532 }
 0x163   : > { %v531_v34 = vpop.xlane.xlu0 %530  ;;  %v791_v38 = vsel %vm790_vm12, %v789_v28, %v784_v30  ;;  %v803_v39 = vrot.slane %v533_v36, %v802_v31 }
 0x164   : > { %v796_v35 = vrot.slane %v531_v34, %v795_v27 }
 0x166   : > { %v798_v40 = vsel %vm797_vm13, %v796_v35, %v791_v38  ;;  %v457_v44 = vpop.xlane.xlu1 %456 }
 0x167   : > { %v455_v41 = vpop.xlane.xlu0 %454  ;;  %v3115_v42 = vsel %vm804_vm14, %v803_v39, %v798_v40 }
 0x168   : > { %v820_v45 = vadd.f32 %v3115_v42, %v457_v44  ;;  %v819_v51 = vadd.f32 %v3115_v42, %v455_v41 }
 0x16a   : > { %v461_v54 = vpop.xlane.xlu1 %460 }
 0x16b   : > { %v459_v2 = vpop.xlane.xlu0 %458  ;;  %v822_v59 = vadd.f32 %v3115_v42, %v461_v54 }
 0x16c   : > { %v821_v4 = vadd.f32 %v3115_v42, %v459_v2 }
 0x16e   : > { %v465_v19 = vpop.xlane.xlu1 %464 }
 0x16f   : > { %v463_v10 = vpop.xlane.xlu0 %462  ;;  %v824_v25 = vadd.f32 %v3115_v42, %v465_v19 }
 0x170   : > { %v823_v14 = vadd.f32 %v3115_v42, %v463_v10 }
 0x173   : > { %v467_v39 = vpop.xlane.xlu0 %466 }
 0x174   : > { %v825_v40 = vadd.f32 %v3115_v42, %v467_v39 }
 0x1cc   : > { %v1968_v1 = vpop.f32.mrb[0].mxu0 }
 0x1cd   : > { %v836_v49 = vmul.f32 2.0, %v1968_v1  ;;  %v600_v50 = vpop.f32.mrb[1].mxu0 }
 0x1ce   : > { %v835_v52 = vmul.f32 2.0, %v600_v50 }
 0x1cf   : > { %v852_v53 = vsub.f32 %v820_v45, %v836_v49  ;;  %v469_v49 = vpop.xlane.xlu1 %468 }
 0x1d0   : > { %v851_v55 = vsub.f32 %v819_v51, %v835_v52  ;;  %v1971_v56 = vpop.f32.mrb[2].mxu0  ;;  %v826_v52 = vadd.f32 %v3115_v42, %v469_v49 }
 0x1d1   : > { %v868_v61 = vmax.f32 %v852_v53, 0.0  ;;  %v838_v0 = vmul.f32 2.0, %v1971_v56  ;;  %v610_v3 = vpop.f32.mrb[3].mxu0 }
 0x1d2   : > { %v867_v6 = vmax.f32 %v851_v55, 0.0  ;;  %v837_v7 = vmul.f32 2.0, %v610_v3 }
 0x1d3   : > { %v884_v33 = vmul.f32 -0.5, %v868_v61  ;;  %v854_v9 = vsub.f32 %v822_v59, %v838_v0 }
 0x1d4   : > { %v883_v11 = vmul.f32 -0.5, %v867_v6  ;;  %v853_v12 = vsub.f32 %v821_v4, %v837_v7  ;;  %v1974_v13 = vpop.f32.mrb[4].mxu0  ;;  %v471_v6 = vpop.xlane.xlu0 %470 }
 0x1d5   : > { %v901_v15 = vmul.f32 1.442695, %v884_v33  ;;  %v840_v16 = vmul.f32 2.0, %v1974_v13  ;;  %v620_v18 = vpop.f32.mrb[5].mxu0  ;;  %v870_v22 = vmax.f32 %v854_v9, 0.0  ;;  %v827_v33 = vadd.f32 %v3115_v42, %v471_v6 }
 0x1d6   : > { %v899_v21 = vmul.f32 1.442695, %v883_v11  ;;  %v869_v23 = vmax.f32 %v853_v12, 0.0  ;;  %v839_v24 = vmul.f32 2.0, %v620_v18 }
 0x1d7   : > { %v856_v30 = vsub.f32 %v824_v25, %v840_v16  ;;  %v886_v34 = vmul.f32 -0.5, %v870_v22  ;;  %v473_v16 = vpop.xlane.xlu1 %472 }
 0x1d8   : > { %2231 = vpow2.f32 %v899_v21  ;;  %v885_v26 = vmul.f32 -0.5, %v869_v23  ;;  %v855_v27 = vsub.f32 %v823_v14, %v839_v24  ;;  %v1977_v28 = vpop.f32.mrb[6].mxu0  ;;  %v828_v21 = vadd.f32 %v3115_v42, %v473_v16 }
 0x1d9   : > { %2233 = vpow2.f32 %v901_v15  ;;  %v630_v31 = vpop.f32.mrb[7].mxu0  ;;  %v872_v44 = vmax.f32 %v856_v30, 0.0  ;;  %v842_v1 = vmul.f32 2.0, %v1977_v28  ;;  %v905_v50 = vmul.f32 1.442695, %v886_v34 }
 0x1da   : > { %v903_v35 = vmul.f32 1.442695, %v885_v26  ;;  %v871_v36 = vmax.f32 %v855_v27, 0.0  ;;  %v841_v38 = vmul.f32 2.0, %v630_v31 }
 0x1db   : > { %v888_v54 = vmul.f32 -0.5, %v872_v44  ;;  %v858_v55 = vsub.f32 %v826_v52, %v842_v1 }
 0x1dc   : > { %v1980_v41 = vpop.f32.mrb[8].mxu0  ;;  %2235 = vpow2.f32 %v903_v35  ;;  %v887_v51 = vmul.f32 -0.5, %v871_v36  ;;  %v857_v2 = vsub.f32 %v825_v40, %v841_v38  ;;  %v477_v36 = vpop.xlane.xlu1 %476 }
 0x1dd   : > { %v640_v45 = vpop.f32.mrb[9].mxu0  ;;  %2237 = vpow2.f32 %v905_v50  ;;  %v909_v10 = vmul.f32 1.442695, %v888_v54  ;;  %v874_v11 = vmax.f32 %v858_v55, 0.0  ;;  %v844_v14 = vmul.f32 2.0, %v1980_v41 }
 0x1de   : > { %v907_v61 = vmul.f32 1.442695, %v887_v51  ;;  %v873_v0 = vmax.f32 %v857_v2, 0.0  ;;  %v843_v3 = vmul.f32 2.0, %v640_v45 }
 0x1df   : > { %v890_v23 = vmul.f32 -0.5, %v874_v11  ;;  %v860_v25 = vsub.f32 %v828_v21, %v844_v14 }
 0x1e0   : > { %v1983_v53 = vpop.f32.mrb[10].mxu0  ;;  %2239 = vpow2.f32 %v907_v61  ;;  %v889_v13 = vmul.f32 -0.5, %v873_v0  ;;  %v859_v15 = vsub.f32 %v827_v33, %v843_v3  ;;  %v481_v54 = vpop.xlane.xlu1 %480 }
 0x1e1   : > { %v650_v56 = vpop.f32.mrb[11].mxu0  ;;  %2241 = vpow2.f32 %v909_v10  ;;  %v913_v34 = vmul.f32 1.442695, %v890_v23  ;;  %v846_v35 = vmul.f32 2.0, %v1983_v53  ;;  %v876_v38 = vmax.f32 %v860_v25, 0.0 }
 0x1e2   : > { %v2232_v59 = vpop.eup %2231  ;;  %v875_v26 = vmax.f32 %v859_v15, 0.0  ;;  %v845_v27 = vmul.f32 2.0, %v650_v56 }
 0x1e3   : > { %v2234_v4 = vpop.eup %2233  ;;  %v931_v7 = vmul.f32 1.2, %v2232_v59  ;;  %v892_v1 = vmul.f32 -0.5, %v876_v38 }
 0x1e4   : > { %v3126_v9 = vpop.f32.mrb[12].mxu0  ;;  %v932_v18 = vmul.f32 1.2, %v2234_v4  ;;  %v891_v39 = vmul.f32 -0.5, %v875_v26 }
 0x1e5   : > { %v660_v12 = vpop.f32.mrb[13].mxu0  ;;  %1140 = vmatmul.mubr.f32.vlgmr.msra.gmra.mrb[0].mxu1 %v931_v7  ;;  %1301 = vmatmul.mubr.f32.vlgmr.msra.gmra.mrb[16].mxu0 %v931_v7  ;;  %v848_v53 = vmul.f32 2.0, %v3126_v9  ;;  %v917_v55 = vmul.f32 1.442695, %v892_v1  ;;  %v950_v1 = vld [vmem:[#allocation2 + $0x18] sm:$0xff] }
 0x1e6   : > { %2094 = vmatpush1.bf16.msra.mxu1 %v2973_v37  ;;  %1145 = vmatprep.mubr.f32.mxu1 %v2521_v63  ;;  %v2236_v19 = vpop.eup %2235  ;;  %v911_v37 = vmul.f32 1.442695, %v889_v13  ;;  %v915_v45 = vmul.f32 1.442695, %v891_v39  ;;  %v847_v50 = vmul.f32 2.0, %v660_v12 }
 0x1e7   : > { %1306 = vmatprep.mubr.f32.mxu0 %v2521_v63  ;;  %2087 = vmatprep.subr.bf16.mxu1 %v2983_v46  ;;  %v475_v46 = vpop.xlane.xlu0 %474  ;;  %v933_v28 = vmul.f32 1.2, %v2236_v19  ;;  %v2238_v30 = vpop.eup %2237 }
 0x1e8   : > { %v3133_v22 = vpop.f32.mrb[14].mxu0  ;;  %v829_v31 = vadd.f32 %v3115_v42, %v475_v46  ;;  %2243 = vpow2.f32 %v911_v37  ;;  %v934_v41 = vmul.f32 1.2, %v2238_v30 }
 0x1e9   : > { %v3135_v24 = vpop.f32.mrb[15].mxu0  ;;  %1146 = vmatmul.mubr.f32.gmra.mrb[2].mxu1 %v932_v18  ;;  %1307 = vmatmul.mubr.f32.gmra.mrb[18].mxu0 %v932_v18  ;;  %2245 = vpow2.f32 %v913_v34  ;;  %v850_v14 = vmul.f32 2.0, %v3133_v22 }
 0x1ea   : > { %1151 = vmatprep.mubr.f32.mxu1 %v2521_v63  ;;  %1312 = vmatprep.mubr.f32.mxu0 %v2521_v63  ;;  %v861_v40 = vsub.f32 %v829_v31, %v845_v27  ;;  %v2240_v44 = vpop.eup %2239  ;;  %2247 = vpow2.f32 %v915_v45  ;;  %v849_v33 = vmul.f32 2.0, %v3135_v24 }
 0x1eb   : > { %2095 = vmatpush1.bf16.msra.mxu1 %v2987_v48  ;;  %v830_v48 = vadd.f32 %v3115_v42, %v477_v36  ;;  %v2242_v51 = vpop.eup %2241  ;;  %v479_v2 = vpop.xlane.xlu0 %478  ;;  %v935_v52 = vmul.f32 1.2, %v2240_v44  ;;  %2249 = vpow2.f32 %v917_v55  ;;  %v949_v44 = vld [vmem:[#allocation2 + $0x10] sm:$0xff]  ;;  %v952_v55 = vld [vmem:[#allocation2 + $0x28] sm:$0xff] }
 0x1ec   : > { %2088 = vmatprep.subr.bf16.mxu1 %v2998_v57  ;;  %v877_v49 = vmax.f32 %v861_v40, 0.0  ;;  %v936_v61 = vmul.f32 1.2, %v2242_v51 }
 0x1ed   : > { %1152 = vmatmul.mubr.f32.gmra.mrb[4].mxu1 %v933_v28  ;;  %1313 = vmatmul.mubr.f32.gmra.mrb[20].mxu0 %v933_v28  ;;  %v862_v57 = vsub.f32 %v830_v48, %v846_v35 }
 0x1ee   : > { %1157 = vmatprep.mubr.f32.mxu1 %v2521_v63  ;;  %1318 = vmatprep.mubr.f32.mxu0 %v2521_v63  ;;  %v893_v56 = vmul.f32 -0.5, %v877_v49 }
 0x1ef   : > { %2096 = vmatpush1.bf16.msra.mxu1 %v3002_v60  ;;  %v831_v60 = vadd.f32 %v3115_v42, %v479_v2  ;;  %v483_v0 = vpop.xlane.xlu0 %482 }
 0x1f0   : > { %2089 = vmatprep.subr.bf16.mxu1 %v3012_v5  ;;  %v878_v5 = vmax.f32 %v862_v57, 0.0  ;;  %v919_v6 = vmul.f32 1.442695, %v893_v56  ;;  %v948_v57 = vld [vmem:[#allocation2 + $0x8] sm:$0xff]  ;;  %v954_v56 = vld [vmem:[#allocation2 + $0x38] sm:$0xff] }
 0x1f1   : > { %1158 = vmatmul.mubr.f32.gmra.mrb[6].mxu1 %v934_v41  ;;  %1319 = vmatmul.mubr.f32.gmra.mrb[22].mxu0 %v934_v41  ;;  %v863_v59 = vsub.f32 %v831_v60, %v847_v50  ;;  %v947_v41 = vld [vmem:[#allocation2] sm:$0xff] }
 0x1f2   : > { %1163 = vmatprep.mubr.f32.mxu1 %v2521_v63  ;;  %1324 = vmatprep.mubr.f32.mxu0 %v2521_v63  ;;  %v894_v3 = vmul.f32 -0.5, %v878_v5  ;;  %2251 = vpow2.f32 %v919_v6  ;;  %v955_v6 = vld [vmem:[#allocation2 + $0x40] sm:$0xff] }
 0x1f3   : > { %2097 = vmatpush1.bf16.msra.mxu1 %v3016_v8  ;;  %v832_v8 = vadd.f32 %v3115_v42, %v481_v54  ;;  %v879_v7 = vmax.f32 %v863_v59, 0.0  ;;  %v953_v54 = vld [vmem:[#allocation2 + $0x30] sm:$0xff] }
 0x1f4   : > { %2090 = vmatprep.subr.bf16.mxu1 %v3026_v17  ;;  %v2244_v17 = vpop.eup %2243  ;;  %v921_v11 = vmul.f32 1.442695, %v894_v3 }
 0x1f5   : > { %1164 = vmatmul.mubr.f32.gmra.mrb[8].mxu1 %v935_v52  ;;  %1325 = vmatmul.mubr.f32.gmra.mrb[24].mxu0 %v935_v52  ;;  %v864_v4 = vsub.f32 %v832_v8, %v848_v53  ;;  %v2246_v9 = vpop.eup %2245  ;;  %v937_v10 = vmul.f32 1.2, %v2244_v17  ;;  %v895_v13 = vmul.f32 -0.5, %v879_v7  ;;  %v951_v53 = vld [vmem:[#allocation2 + $0x20] sm:$0xff]  ;;  %v957_v7 = vld [vmem:[#allocation2 + $0x50] sm:$0xff] }
 0x1f6   : > { %1169 = vmatprep.mubr.f32.mxu1 %v2521_v63  ;;  %1330 = vmatprep.mubr.f32.mxu0 %v2521_v63  ;;  %v938_v16 = vmul.f32 1.2, %v2246_v9  ;;  %2253 = vpow2.f32 %v921_v11  ;;  %v958_v9 = vld [vmem:[#allocation2 + $0x58] sm:$0xff] }
 0x1f7   : > { %2098 = vmatpush1.bf16.msra.mxu1 %v3030_v20  ;;  %v833_v20 = vadd.f32 %v3115_v42, %v483_v0  ;;  %v880_v12 = vmax.f32 %v864_v4, 0.0  ;;  %v923_v19 = vmul.f32 1.442695, %v895_v13 }
 0x1f8   : > { %2091 = vmatprep.subr.bf16.mxu1 %v3040_v29  ;;  %v485_v29 = vpop.xlane.xlu1 %484 }
 0x1f9   : > { %1170 = vmatmul.mubr.f32.gmra.mrb[10].mxu1 %v936_v61  ;;  %1331 = vmatmul.mubr.f32.gmra.mrb[26].mxu0 %v936_v61  ;;  %v865_v15 = vsub.f32 %v833_v20, %v849_v33  ;;  %v896_v18 = vmul.f32 -0.5, %v880_v12  ;;  %2255 = vpow2.f32 %v923_v19  ;;  %v956_v33 = vld [vmem:[#allocation2 + $0x48] sm:$0xff] }
 0x1fa   : > { %1175 = vmatprep.mubr.f32.mxu1 %v2521_v63  ;;  %1336 = vmatprep.mubr.f32.mxu0 %v2521_v63 }
 0x1fb   : > { %2099 = vmatpush1.bf16.msra.mxu1 %v3044_v32  ;;  %v2248_v32 = vpop.eup %2247  ;;  %v881_v22 = vmax.f32 %v865_v15, 0.0 }
 0x1fc   : > { %2092 = vmatprep.subr.bf16.mxu1 %v3054_v43  ;;  %v834_v43 = vadd.f32 %v3115_v42, %v485_v29  ;;  %v939_v23 = vmul.f32 1.2, %v2248_v32  ;;  %v2250_v24 = vpop.eup %2249  ;;  %v961_v32 = vld [vmem:[#allocation2 + $0x70] sm:$0xff] }
 0x1fd   : > { %1176 = vmatmul.mubr.f32.gmra.mrb[12].mxu1 %v937_v10  ;;  %1337 = vmatmul.mubr.f32.gmra.mrb[28].mxu0 %v937_v10  ;;  %v897_v42 = vmul.f32 -0.5, %v881_v22  ;;  %v2252_v25 = vpop.eup %2251 }
 0x1fe   : > { %1181 = vmatprep.mubr.f32.mxu1 %v2521_v63  ;;  %1342 = vmatprep.mubr.f32.mxu0 %v2521_v63  ;;  %v866_v21 = vsub.f32 %v834_v43, %v850_v14  ;;  %v941_v28 = vmul.f32 1.2, %v2252_v25  ;;  %v960_v43 = vld [vmem:[#allocation2 + $0x68] sm:$0xff]  ;;  %v965_v25 = vld [vmem:[#allocation2 + $0x90] sm:$0xff] }
 0x1ff   : > { %2100 = vmatpush1.bf16.msra.mxu1 %v3058_v47  ;;  %v925_v47 = vmul.f32 1.442695, %v896_v18  ;;  %v927_v27 = vmul.f32 1.442695, %v897_v42  ;;  %v962_v18 = vld [vmem:[#allocation2 + $0x78] sm:$0xff] }
 0x200   : > { %2093 = vmatprep.subr.bf16.mxu1 %v3068_v58  ;;  %v882_v37 = vmax.f32 %v866_v21, 0.0  ;;  %v940_v58 = vmul.f32 1.2, %v2250_v24  ;;  %v2254_v46 = vpop.eup %2253 }
 0x201   : > { %1182 = vmatmul.mubr.f32.gmra.mrb[14].mxu1 %v938_v16  ;;  %1343 = vmatmul.mubr.f32.gmra.mrb[30].mxu0 %v938_v16  ;;  %2257 = vpow2.f32 %v925_v47  ;;  %v942_v30 = vmul.f32 1.2, %v2254_v46  ;;  %v959_v16 = vld [vmem:[#allocation2 + $0x60] sm:$0xff] }
 0x202   : > { %1187 = vmatprep.mubr.f32.mxu1 %v2521_v63  ;;  %v898_v26 = vmul.f32 -0.5, %v882_v37  ;;  %2259 = vpow2.f32 %v927_v27  ;;  %v966_v27 = vld [vmem:[#allocation2 + $0x98] sm:$0xff] }
 0x203   : > { %2101 = vmatpush1.bf16.msra.mxu1 %v3072_v62  ;;  %v2256_v31 = vpop.eup %2255 }
 0x204   : > { %v929_v62 = vmul.f32 1.442695, %v898_v26  ;;  %v943_v34 = vmul.f32 1.2, %v2256_v31  ;;  %v964_v26 = vld [vmem:[#allocation2 + $0x88] sm:$0xff] }
 0x205   : > { %1188 = vmatmul.mubr.f32.gmra.mrb[16].mxu1 %v939_v23 }
 0x206   : > { %1193 = vmatprep.mubr.f32.mxu1 %v2521_v63  ;;  %2261 = vpow2.f32 %v929_v62 }
 0x209   : > { %1194 = vmatmul.mubr.f32.gmra.mrb[18].mxu1 %v940_v58 }
 0x20a   : > { %1199 = vmatprep.mubr.f32.mxu1 %v2521_v63 }
 0x20b   : > { %v2258_v35 = vpop.eup %2257 }
 0x20c   : > { %v944_v36 = vmul.f32 1.2, %v2258_v35  ;;  %v2260_v38 = vpop.eup %2259 }
 0x20d   : > { %1200 = vmatmul.mubr.f32.gmra.mrb[20].mxu1 %v941_v28  ;;  %v945_v39 = vmul.f32 1.2, %v2260_v38  ;;  %v967_v38 = vld [vmem:[#allocation2 + $0xa0] sm:$0xff] }
 0x20e   : > { %1205 = vmatprep.mubr.f32.mxu1 %v2521_v63 }
 0x210   : > { %v2262_v40 = vpop.eup %2261 }
 0x211   : > { %1206 = vmatmul.mubr.f32.gmra.mrb[22].mxu1 %v942_v30  ;;  %v946_v48 = vmul.f32 1.2, %v2262_v40  ;;  %v968_v40 = vld [vmem:[#allocation2 + $0xa8] sm:$0xff] }
 0x212   : > { %1211 = vmatprep.mubr.f32.mxu1 %v2521_v63 }
 0x215   : > { %1212 = vmatmul.mubr.f32.gmra.mrb[24].mxu1 %v943_v34 }
 0x216   : > { %1217 = vmatprep.mubr.f32.mxu1 %v2521_v63 }
 0x219   : > { %1218 = vmatmul.mubr.f32.gmra.mrb[26].mxu1 %v944_v36 }
 0x21a   : > { %1223 = vmatprep.mubr.f32.mxu1 %v2521_v63 }
 0x21d   : > { %1224 = vmatmul.mubr.f32.gmra.mrb[28].mxu1 %v945_v39 }
 0x21e   : > { %1229 = vmatprep.mubr.f32.mxu1 %v2521_v63 }
 0x221   : > { %1230 = vmatmul.mubr.f32.gmra.mrb[30].mxu1 %v946_v48 }
 0x222   : > { %1348 = vmatprep.mubr.f32.mxu1 %v2521_v63 }
 0x225   : > { %1349 = vmatmul.mubr.f32.vlgmr.msra.gmra.mrb[32].mxu1 %v939_v23 }
 0x226   : > { %1354 = vmatprep.mubr.f32.mxu1 %v2521_v63 }
 0x229   : > { %1355 = vmatmul.mubr.f32.gmra.mrb[34].mxu1 %v940_v58  ;;  %v963_v58 = vld [vmem:[#allocation2 + $0x80] sm:$0xff] }
 0x22a   : > { %1360 = vmatprep.mubr.f32.mxu1 %v2521_v63 }
 0x22d   : > { %1361 = vmatmul.mubr.f32.gmra.mrb[36].mxu1 %v941_v28 }
 0x22e   : > { %1366 = vmatprep.mubr.f32.mxu1 %v2521_v63 }
 0x231   : > { %1367 = vmatmul.mubr.f32.gmra.mrb[38].mxu1 %v942_v30 }
 0x232   : > { %1372 = vmatprep.mubr.f32.mxu1 %v2521_v63 }
 0x235   : > { %1373 = vmatmul.mubr.f32.gmra.mrb[40].mxu1 %v943_v34 }
 0x236   : > { %1378 = vmatprep.mubr.f32.mxu1 %v2521_v63 }
 0x239   : > { %1379 = vmatmul.mubr.f32.gmra.mrb[42].mxu1 %v944_v36 }
 0x23a   : > { %1384 = vmatprep.mubr.f32.mxu1 %v2521_v63 }
 0x23d   : > { %1385 = vmatmul.mubr.f32.gmra.mrb[44].mxu1 %v945_v39  ;;  %v969_v39 = vld [vmem:[#allocation2 + $0xb0] sm:$0xff] }
 0x23e   : > { %1390 = vmatprep.mubr.f32.mxu1 %v2521_v63 }
 0x241   : > { %1391 = vmatmul.mubr.f32.gmra.mrb[46].mxu1 %v946_v48  ;;  %v970_v48 = vld [vmem:[#allocation2 + $0xb8] sm:$0xff] }
 0x2b8   : > { %v1141_v45 = vpop.f32.mrb[0].mxu1  ;;  %v1302_v49 = vpop.f32.mrb[16].mxu0 }
 0x2b9   : > { %v1397_v50 = vadd.f32 %v1141_v45, %v947_v41  ;;  %v1399_v51 = vadd.f32 %v1302_v49, %v949_v44  ;;  %v1143_v2 = vpop.f32.mrb[1].mxu1  ;;  %v1304_v52 = vpop.f32.mrb[17].mxu0 }
 0x2ba   : > { %v1398_v60 = vadd.f32 %v1143_v2, %v948_v57  ;;  %v1400_v5 = vadd.f32 %v1304_v52, %v950_v1  ;;  %v971_v2 = vld [vmem:[#allocation2 + $0xc0] sm:$0xff]  ;;  %v973_v52 = vld [vmem:[#allocation2 + $0xd0] sm:$0xff] }
 0x2bb   : > { %1461 = vst [vmem:[#allocation2] sm:$0xff] %v1397_v50  ;;  %1463 = vst [vmem:[#allocation2 + $0x10] sm:$0xff] %v1399_v51 }
 0x2bc   : > { %1462 = vst [vmem:[#allocation2 + $0x8] sm:$0xff] %v1398_v60  ;;  %1464 = vst [vmem:[#allocation2 + $0x18] sm:$0xff] %v1400_v5  ;;  %v1147_v63 = vpop.f32.mrb[2].mxu1  ;;  %v1308_v59 = vpop.f32.mrb[18].mxu0  ;;  %v972_v60 = vld [vmem:[#allocation2 + $0xc8] sm:$0xff]  ;;  %v974_v5 = vld [vmem:[#allocation2 + $0xd8] sm:$0xff] }
 0x2bd   : > { %v1401_v8 = vadd.f32 %v1147_v63, %v951_v53  ;;  %v1403_v61 = vadd.f32 %v1308_v59, %v953_v54  ;;  %v1149_v17 = vpop.f32.mrb[3].mxu1  ;;  %v1310_v0 = vpop.f32.mrb[19].mxu0 }
 0x2be   : > { %v1402_v3 = vadd.f32 %v1149_v17, %v952_v55  ;;  %v1404_v4 = vadd.f32 %v1310_v0, %v954_v56  ;;  %v975_v17 = vld [vmem:[#allocation2 + $0xe0] sm:$0xff]  ;;  %v977_v0 = vld [vmem:[#allocation2 + $0xf0] sm:$0xff] }
 0x2bf   : > { %1465 = vst [vmem:[#allocation2 + $0x20] sm:$0xff] %v1401_v8  ;;  %1467 = vst [vmem:[#allocation2 + $0x30] sm:$0xff] %v1403_v61 }
 0x2c0   : > { %1466 = vst [vmem:[#allocation2 + $0x28] sm:$0xff] %v1402_v3  ;;  %1468 = vst [vmem:[#allocation2 + $0x38] sm:$0xff] %v1404_v4  ;;  %v1153_v10 = vpop.f32.mrb[4].mxu1  ;;  %v1314_v20 = vpop.f32.mrb[20].mxu0  ;;  %v976_v3 = vld [vmem:[#allocation2 + $0xe8] sm:$0xff]  ;;  %v978_v4 = vld [vmem:[#allocation2 + $0xf8] sm:$0xff] }
 0x2c1   : > { %v1405_v29 = vadd.f32 %v1153_v10, %v955_v6  ;;  %v1407_v11 = vadd.f32 %v1314_v20, %v957_v7  ;;  %v1155_v12 = vpop.f32.mrb[5].mxu1  ;;  %v1316_v13 = vpop.f32.mrb[21].mxu0 }
 0x2c2   : > { %v1406_v14 = vadd.f32 %v1155_v12, %v956_v33  ;;  %v1408_v15 = vadd.f32 %v1316_v13, %v958_v9  ;;  %v979_v12 = vld [vmem:[#allocation2 + $0x100] sm:$0xff]  ;;  %v980_v13 = vld [vmem:[#allocation2 + $0x108] sm:$0xff] }
 0x2c3   : > { %1469 = vst [vmem:[#allocation2 + $0x40] sm:$0xff] %v1405_v29  ;;  %1471 = vst [vmem:[#allocation2 + $0x50] sm:$0xff] %v1407_v11 }
 0x2c4   : > { %1470 = vst [vmem:[#allocation2 + $0x48] sm:$0xff] %v1406_v14  ;;  %1472 = vst [vmem:[#allocation2 + $0x58] sm:$0xff] %v1408_v15  ;;  %v1159_v19 = vpop.f32.mrb[6].mxu1  ;;  %v1320_v21 = vpop.f32.mrb[22].mxu0 }
 0x2c5   : > { %v1409_v22 = vadd.f32 %v1159_v19, %v959_v16  ;;  %v1411_v23 = vadd.f32 %v1320_v21, %v961_v32  ;;  %v1161_v24 = vpop.f32.mrb[7].mxu1  ;;  %v1322_v47 = vpop.f32.mrb[23].mxu0 }
 0x2c6   : > { %v1410_v37 = vadd.f32 %v1161_v24, %v960_v43  ;;  %v1412_v42 = vadd.f32 %v1322_v47, %v962_v18  ;;  %v983_v43 = vld [vmem:[#allocation2 + $0x120] sm:$0xff]  ;;  %v984_v18 = vld [vmem:[#allocation2 + $0x128] sm:$0xff] }
 0x2c7   : > { %1473 = vst [vmem:[#allocation2 + $0x60] sm:$0xff] %v1409_v22  ;;  %1475 = vst [vmem:[#allocation2 + $0x70] sm:$0xff] %v1411_v23  ;;  %v987_v24 = vld [vmem:[#allocation2 + $0x140] sm:$0xff]  ;;  %v988_v47 = vld [vmem:[#allocation2 + $0x148] sm:$0xff] }
 0x2c8   : > { %1474 = vst [vmem:[#allocation2 + $0x68] sm:$0xff] %v1410_v37  ;;  %1476 = vst [vmem:[#allocation2 + $0x78] sm:$0xff] %v1412_v42  ;;  %v1165_v46 = vpop.f32.mrb[8].mxu1  ;;  %v1326_v28 = vpop.f32.mrb[24].mxu0 }
 0x2c9   : > { %v1413_v62 = vadd.f32 %v1165_v46, %v963_v58  ;;  %v1415_v30 = vadd.f32 %v1326_v28, %v965_v25  ;;  %v1167_v31 = vpop.f32.mrb[9].mxu1  ;;  %v1328_v34 = vpop.f32.mrb[25].mxu0 }
 0x2ca   : > { %v1414_v35 = vadd.f32 %v1167_v31, %v964_v26  ;;  %v1416_v36 = vadd.f32 %v1328_v34, %v966_v27  ;;  %v991_v26 = vld [vmem:[#allocation2 + $0x160] sm:$0xff]  ;;  %v992_v27 = vld [vmem:[#allocation2 + $0x168] sm:$0xff] }
 0x2cb   : > { %1477 = vst [vmem:[#allocation2 + $0x80] sm:$0xff] %v1413_v62  ;;  %1479 = vst [vmem:[#allocation2 + $0x90] sm:$0xff] %v1415_v30  ;;  %v995_v31 = vld [vmem:[#allocation2 + $0x180] sm:$0xff]  ;;  %v996_v34 = vld [vmem:[#allocation2 + $0x188] sm:$0xff] }
 0x2cc   : > { %1478 = vst [vmem:[#allocation2 + $0x88] sm:$0xff] %v1414_v35  ;;  %1480 = vst [vmem:[#allocation2 + $0x98] sm:$0xff] %v1416_v36  ;;  %v1171_v41 = vpop.f32.mrb[10].mxu1  ;;  %v1332_v44 = vpop.f32.mrb[26].mxu0 }
 0x2cd   : > { %v1417_v57 = vadd.f32 %v1171_v41, %v967_v38  ;;  %v1419_v1 = vadd.f32 %v1332_v44, %v969_v39  ;;  %v1173_v45 = vpop.f32.mrb[11].mxu1  ;;  %v1334_v49 = vpop.f32.mrb[27].mxu0 }
 0x2ce   : > { %v1418_v50 = vadd.f32 %v1173_v45, %v968_v40  ;;  %v1420_v51 = vadd.f32 %v1334_v49, %v970_v48  ;;  %v999_v40 = vld [vmem:[#allocation2 + $0x1a0] sm:$0xff]  ;;  %v1000_v48 = vld [vmem:[#allocation2 + $0x1a8] sm:$0xff] }
 0x2cf   : > { %1481 = vst [vmem:[#allocation2 + $0xa0] sm:$0xff] %v1417_v57  ;;  %1483 = vst [vmem:[#allocation2 + $0xb0] sm:$0xff] %v1419_v1  ;;  %v1003_v45 = vld [vmem:[#allocation2 + $0x1c0] sm:$0xff]  ;;  %v1004_v49 = vld [vmem:[#allocation2 + $0x1c8] sm:$0xff] }
 0x2d0   : > { %1482 = vst [vmem:[#allocation2 + $0xa8] sm:$0xff] %v1418_v50  ;;  %1484 = vst [vmem:[#allocation2 + $0xb8] sm:$0xff] %v1420_v51  ;;  %v1177_v53 = vpop.f32.mrb[12].mxu1  ;;  %v1338_v54 = vpop.f32.mrb[28].mxu0 }
 0x2d1   : > { %v1421_v55 = vadd.f32 %v1177_v53, %v971_v2  ;;  %v1423_v56 = vadd.f32 %v1338_v54, %v973_v52  ;;  %v1179_v63 = vpop.f32.mrb[13].mxu1  ;;  %v1340_v59 = vpop.f32.mrb[29].mxu0 }
 0x2d2   : > { %v1422_v8 = vadd.f32 %v1179_v63, %v972_v60  ;;  %v1424_v61 = vadd.f32 %v1340_v59, %v974_v5  ;;  %v1007_v60 = vld [vmem:[#allocation2 + $0x1e0] sm:$0xff]  ;;  %v1008_v5 = vld [vmem:[#allocation2 + $0x1e8] sm:$0xff]  ;;  %v981_v63 = vld [vmem:[#allocation2 + $0x110] sm:$0xff] }
 0x2d3   : > { %1485 = vst [vmem:[#allocation2 + $0xc0] sm:$0xff] %v1421_v55  ;;  %1487 = vst [vmem:[#allocation2 + $0xd0] sm:$0xff] %v1423_v56  ;;  %v982_v59 = vld [vmem:[#allocation2 + $0x118] sm:$0xff] }
 0x2d4   : > { %1486 = vst [vmem:[#allocation2 + $0xc8] sm:$0xff] %v1422_v8  ;;  %1488 = vst [vmem:[#allocation2 + $0xd8] sm:$0xff] %v1424_v61  ;;  %v1183_v6 = vpop.f32.mrb[14].mxu1  ;;  %v1344_v7 = vpop.f32.mrb[30].mxu0 }
 0x2d5   : > { %v1425_v33 = vadd.f32 %v1183_v6, %v975_v17  ;;  %v1427_v9 = vadd.f32 %v1344_v7, %v977_v0  ;;  %v1185_v10 = vpop.f32.mrb[15].mxu1  ;;  %v1346_v20 = vpop.f32.mrb[31].mxu0 }
 0x2d6   : > { %v1426_v29 = vadd.f32 %v1185_v10, %v976_v3  ;;  %v1428_v11 = vadd.f32 %v1346_v20, %v978_v4  ;;  %v985_v3 = vld [vmem:[#allocation2 + $0x130] sm:$0xff]  ;;  %v986_v4 = vld [vmem:[#allocation2 + $0x138] sm:$0xff] }
 0x2d7   : > { %1489 = vst [vmem:[#allocation2 + $0xe0] sm:$0xff] %v1425_v33  ;;  %1491 = vst [vmem:[#allocation2 + $0xf0] sm:$0xff] %v1427_v9  ;;  %v989_v10 = vld [vmem:[#allocation2 + $0x150] sm:$0xff]  ;;  %v990_v20 = vld [vmem:[#allocation2 + $0x158] sm:$0xff] }
 0x2d8   : > { %1490 = vst [vmem:[#allocation2 + $0xe8] sm:$0xff] %v1426_v29  ;;  %1492 = vst [vmem:[#allocation2 + $0xf8] sm:$0xff] %v1428_v11  ;;  %v1189_v14 = vpop.f32.mrb[16].mxu1 }
 0x2d9   : > { %v1429_v15 = vadd.f32 %v1189_v14, %v979_v12  ;;  %v1191_v16 = vpop.f32.mrb[17].mxu1  ;;  %v993_v14 = vld [vmem:[#allocation2 + $0x170] sm:$0xff] }
 0x2da   : > { %v1430_v32 = vadd.f32 %v1191_v16, %v980_v13 }
 0x2db   : > { %1493 = vst [vmem:[#allocation2 + $0x100] sm:$0xff] %v1429_v15  ;;  %v994_v15 = vld [vmem:[#allocation2 + $0x178] sm:$0xff] }
 0x2dc   : > { %1494 = vst [vmem:[#allocation2 + $0x108] sm:$0xff] %v1430_v32  ;;  %v1195_v19 = vpop.f32.mrb[18].mxu1 }
 0x2dd   : > { %v1433_v21 = vadd.f32 %v1195_v19, %v983_v43  ;;  %v1197_v22 = vpop.f32.mrb[19].mxu1  ;;  %v997_v19 = vld [vmem:[#allocation2 + $0x190] sm:$0xff] }
 0x2de   : > { %v1434_v23 = vadd.f32 %v1197_v22, %v984_v18 }
 0x2df   : > { %1497 = vst [vmem:[#allocation2 + $0x120] sm:$0xff] %v1433_v21  ;;  %v998_v21 = vld [vmem:[#allocation2 + $0x198] sm:$0xff] }
 0x2e0   : > { %1498 = vst [vmem:[#allocation2 + $0x128] sm:$0xff] %v1434_v23  ;;  %v1201_v37 = vpop.f32.mrb[20].mxu1 }
 0x2e1   : > { %v1437_v42 = vadd.f32 %v1201_v37, %v987_v24  ;;  %v1203_v58 = vpop.f32.mrb[21].mxu1  ;;  %v1001_v37 = vld [vmem:[#allocation2 + $0x1b0] sm:$0xff] }
 0x2e2   : > { %v1438_v25 = vadd.f32 %v1203_v58, %v988_v47 }
 0x2e3   : > { %1501 = vst [vmem:[#allocation2 + $0x140] sm:$0xff] %v1437_v42  ;;  %v1002_v42 = vld [vmem:[#allocation2 + $0x1b8] sm:$0xff] }
 0x2e4   : > { %1502 = vst [vmem:[#allocation2 + $0x148] sm:$0xff] %v1438_v25  ;;  %v1207_v46 = vpop.f32.mrb[22].mxu1 }
 0x2e5   : > { %v1441_v28 = vadd.f32 %v1207_v46, %v991_v26  ;;  %v1209_v62 = vpop.f32.mrb[23].mxu1  ;;  %v1005_v46 = vld [vmem:[#allocation2 + $0x1d0] sm:$0xff] }
 0x2e6   : > { %v1442_v30 = vadd.f32 %v1209_v62, %v992_v27 }
 0x2e7   : > { %1505 = vst [vmem:[#allocation2 + $0x160] sm:$0xff] %v1441_v28  ;;  %v1006_v28 = vld [vmem:[#allocation2 + $0x1d8] sm:$0xff] }
 0x2e8   : > { %1506 = vst [vmem:[#allocation2 + $0x168] sm:$0xff] %v1442_v30  ;;  %v1213_v35 = vpop.f32.mrb[24].mxu1 }
 0x2e9   : > { %v1445_v36 = vadd.f32 %v1213_v35, %v995_v31  ;;  %v1215_v38 = vpop.f32.mrb[25].mxu1  ;;  %v1009_v35 = vld [vmem:[#allocation2 + $0x1f0] sm:$0xff] }
 0x2ea   : > { %v1446_v39 = vadd.f32 %v1215_v38, %v996_v34 }
 0x2eb   : > { %1509 = vst [vmem:[#allocation2 + $0x180] sm:$0xff] %v1445_v36  ;;  %v1010_v36 = vld [vmem:[#allocation2 + $0x1f8] sm:$0xff] }
 0x2ec   : > { %1510 = vst [vmem:[#allocation2 + $0x188] sm:$0xff] %v1446_v39  ;;  %v1219_v41 = vpop.f32.mrb[26].mxu1 }
 0x2ed   : > { %v1449_v44 = vadd.f32 %v1219_v41, %v999_v40  ;;  %v1221_v57 = vpop.f32.mrb[27].mxu1  ;;  %v1529_v41 = vld [vmem:[#allocation2] sm:$0xff] (!%p1888_p4) }
 0x2ee   : > { %v1450_v1 = vadd.f32 %v1221_v57, %v1000_v48  ;;  %v1531_v57 = vld [vmem:[#allocation2 + $0x10] sm:$0xff] (!%p1888_p4)  ;;  %1577 = vst [vmem:[%s2838_s15] sm:$0xff] (!%p1888_p4), %v1529_v41 }
 0x2ef   : > { %1513 = vst [vmem:[#allocation2 + $0x1a0] sm:$0xff] %v1449_v44  ;;  %v1530_v44 = vld [vmem:[#allocation2 + $0x8] sm:$0xff] (!%p1888_p4)  ;;  %1579 = vst [vmem:[%s2838_s15 + $0x10] sm:$0xff] (!%p1888_p4), %v1531_v57 }
 0x2f0   : > { %1514 = vst [vmem:[#allocation2 + $0x1a8] sm:$0xff] %v1450_v1  ;;  %v1225_v50 = vpop.f32.mrb[28].mxu1  ;;  %1578 = vst [vmem:[%s2838_s15 + $0x8] sm:$0xff] (!%p1888_p4), %v1530_v44  ;;  %v1532_v1 = vld [vmem:[#allocation2 + $0x20] sm:$0xff] (!%p1888_p4) }
 0x2f1   : > { %v1453_v51 = vadd.f32 %v1225_v50, %v1003_v45  ;;  %v1227_v2 = vpop.f32.mrb[29].mxu1  ;;  %v1533_v45 = vld [vmem:[#allocation2 + $0x28] sm:$0xff] (!%p1888_p4)  ;;  %1580 = vst [vmem:[%s2838_s15 + $0x18] sm:$0xff] (!%p1888_p4), %v1532_v1  ;;  %v1535_v50 = vld [vmem:[#allocation2 + $0x40] sm:$0xff] (!%p1888_p4) }
 0x2f2   : > { %v1454_v52 = vadd.f32 %v1227_v2, %v1004_v49  ;;  %v1534_v49 = vld [vmem:[#allocation2 + $0x30] sm:$0xff] (!%p1888_p4)  ;;  %1581 = vst [vmem:[%s2838_s15 + $0x20] sm:$0xff] (!%p1888_p4), %v1533_v45  ;;  %1583 = vst [vmem:[%s2838_s15 + $0x30] sm:$0xff] (!%p1888_p4), %v1535_v50 }
 0x2f3   : > { %1517 = vst [vmem:[#allocation2 + $0x1c0] sm:$0xff] %v1453_v51  ;;  %1582 = vst [vmem:[%s2838_s15 + $0x28] sm:$0xff] (!%p1888_p4), %v1534_v49  ;;  %v1536_v51 = vld [vmem:[#allocation2 + $0x48] sm:$0xff] (!%p1888_p4)  ;;  %v1537_v2 = vld [vmem:[#allocation2 + $0x50] sm:$0xff] (!%p1888_p4) }
 0x2f4   : > { %1518 = vst [vmem:[#allocation2 + $0x1c8] sm:$0xff] %v1454_v52  ;;  %v1231_v53 = vpop.f32.mrb[30].mxu1  ;;  %1584 = vst [vmem:[%s2838_s15 + $0x38] sm:$0xff] (!%p1888_p4), %v1536_v51  ;;  %v1538_v52 = vld [vmem:[#allocation2 + $0x60] sm:$0xff] (!%p1888_p4) }
 0x2f5   : > { %v1457_v54 = vadd.f32 %v1231_v53, %v1007_v60  ;;  %v1233_v55 = vpop.f32.mrb[31].mxu1  ;;  %1585 = vst [vmem:[%s2838_s15 + $0x40] sm:$0xff] (!%p1888_p4), %v1537_v2  ;;  %v1539_v60 = vld [vmem:[#allocation2 + $0x68] sm:$0xff] (!%p1888_p4)  ;;  %1586 = vst [vmem:[%s2838_s15 + $0x48] sm:$0xff] (!%p1888_p4), %v1538_v52  ;;  %v1541_v53 = vld [vmem:[#allocation2 + $0x80] sm:$0xff] (!%p1888_p4) }
 0x2f6   : > { %v1458_v56 = vadd.f32 %v1233_v55, %v1008_v5  ;;  %v1540_v5 = vld [vmem:[#allocation2 + $0x70] sm:$0xff] (!%p1888_p4)  ;;  %1587 = vst [vmem:[%s2838_s15 + $0x50] sm:$0xff] (!%p1888_p4), %v1539_v60  ;;  %1589 = vst [vmem:[%s2838_s15 + $0x60] sm:$0xff] (!%p1888_p4), %v1541_v53 }
 0x2f7   : > { %1521 = vst [vmem:[#allocation2 + $0x1e0] sm:$0xff] %v1457_v54  ;;  %1588 = vst [vmem:[%s2838_s15 + $0x58] sm:$0xff] (!%p1888_p4), %v1540_v5  ;;  %v1542_v54 = vld [vmem:[#allocation2 + $0x88] sm:$0xff] (!%p1888_p4)  ;;  %v1543_v55 = vld [vmem:[#allocation2 + $0x90] sm:$0xff] (!%p1888_p4) }
 0x2f8   : > { %1522 = vst [vmem:[#allocation2 + $0x1e8] sm:$0xff] %v1458_v56  ;;  %v1350_v8 = vpop.f32.mrb[32].mxu1  ;;  %1590 = vst [vmem:[%s2838_s15 + $0x68] sm:$0xff] (!%p1888_p4), %v1542_v54  ;;  %v1544_v56 = vld [vmem:[#allocation2 + $0xa0] sm:$0xff] (!%p1888_p4) }
 0x2f9   : > { %v1431_v61 = vadd.f32 %v1350_v8, %v981_v63  ;;  %v1352_v17 = vpop.f32.mrb[33].mxu1  ;;  %1591 = vst [vmem:[%s2838_s15 + $0x70] sm:$0xff] (!%p1888_p4), %v1543_v55  ;;  %v1545_v63 = vld [vmem:[#allocation2 + $0xa8] sm:$0xff] (!%p1888_p4)  ;;  %1592 = vst [vmem:[%s2838_s15 + $0x78] sm:$0xff] (!%p1888_p4), %v1544_v56  ;;  %v1547_v8 = vld [vmem:[#allocation2 + $0xc0] sm:$0xff] (!%p1888_p4) }
 0x2fa   : > { %v1432_v0 = vadd.f32 %v1352_v17, %v982_v59  ;;  %v1546_v59 = vld [vmem:[#allocation2 + $0xb0] sm:$0xff] (!%p1888_p4)  ;;  %1593 = vst [vmem:[%s2838_s15 + $0x80] sm:$0xff] (!%p1888_p4), %v1545_v63  ;;  %1595 = vst [vmem:[%s2838_s15 + $0x90] sm:$0xff] (!%p1888_p4), %v1547_v8 }
 0x2fb   : > { %1495 = vst [vmem:[#allocation2 + $0x110] sm:$0xff] %v1431_v61  ;;  %1594 = vst [vmem:[%s2838_s15 + $0x88] sm:$0xff] (!%p1888_p4), %v1546_v59  ;;  %v1548_v61 = vld [vmem:[#allocation2 + $0xc8] sm:$0xff] (!%p1888_p4)  ;;  %v1549_v17 = vld [vmem:[#allocation2 + $0xd0] sm:$0xff] (!%p1888_p4) }
 0x2fc   : > { %1496 = vst [vmem:[#allocation2 + $0x118] sm:$0xff] %v1432_v0  ;;  %v1356_v6 = vpop.f32.mrb[34].mxu1  ;;  %1596 = vst [vmem:[%s2838_s15 + $0x98] sm:$0xff] (!%p1888_p4), %v1548_v61  ;;  %v1550_v0 = vld [vmem:[#allocation2 + $0xe0] sm:$0xff] (!%p1888_p4) }
 0x2fd   : > { %v1435_v7 = vadd.f32 %v1356_v6, %v985_v3  ;;  %v1358_v33 = vpop.f32.mrb[35].mxu1  ;;  %1597 = vst [vmem:[%s2838_s15 + $0xa0] sm:$0xff] (!%p1888_p4), %v1549_v17  ;;  %v1551_v3 = vld [vmem:[#allocation2 + $0xe8] sm:$0xff] (!%p1888_p4)  ;;  %1598 = vst [vmem:[%s2838_s15 + $0xa8] sm:$0xff] (!%p1888_p4), %v1550_v0  ;;  %v1553_v6 = vld [vmem:[#allocation2 + $0x100] sm:$0xff] (!%p1888_p4) }
 0x2fe   : > { %v1436_v9 = vadd.f32 %v1358_v33, %v986_v4  ;;  %v1552_v4 = vld [vmem:[#allocation2 + $0xf0] sm:$0xff] (!%p1888_p4)  ;;  %1599 = vst [vmem:[%s2838_s15 + $0xb0] sm:$0xff] (!%p1888_p4), %v1551_v3  ;;  %1601 = vst [vmem:[%s2838_s15 + $0xc0] sm:$0xff] (!%p1888_p4), %v1553_v6 }
 0x2ff   : > { %1499 = vst [vmem:[#allocation2 + $0x130] sm:$0xff] %v1435_v7  ;;  %1600 = vst [vmem:[%s2838_s15 + $0xb8] sm:$0xff] (!%p1888_p4), %v1552_v4  ;;  %v1554_v7 = vld [vmem:[#allocation2 + $0x108] sm:$0xff] (!%p1888_p4) }
 0x300   : > { %1500 = vst [vmem:[#allocation2 + $0x138] sm:$0xff] %v1436_v9  ;;  %v1362_v29 = vpop.f32.mrb[36].mxu1  ;;  %1602 = vst [vmem:[%s2838_s15 + $0xc8] sm:$0xff] (!%p1888_p4), %v1554_v7  ;;  %v1556_v9 = vld [vmem:[#allocation2 + $0x120] sm:$0xff] (!%p1888_p4) }
 0x301   : > { %v1439_v11 = vadd.f32 %v1362_v29, %v989_v10  ;;  %v1364_v12 = vpop.f32.mrb[37].mxu1  ;;  %v1557_v10 = vld [vmem:[#allocation2 + $0x128] sm:$0xff] (!%p1888_p4)  ;;  %1604 = vst [vmem:[%s2838_s15 + $0xd8] sm:$0xff] (!%p1888_p4), %v1556_v9  ;;  %v1559_v29 = vld [vmem:[#allocation2 + $0x140] sm:$0xff] (!%p1888_p4) }
 0x302   : > { %v1440_v13 = vadd.f32 %v1364_v12, %v990_v20  ;;  %v1555_v33 = vld [vmem:[#allocation2 + $0x110] sm:$0xff] (!%p1888_p4)  ;;  %1605 = vst [vmem:[%s2838_s15 + $0xe0] sm:$0xff] (!%p1888_p4), %v1557_v10  ;;  %1607 = vst [vmem:[%s2838_s15 + $0xf0] sm:$0xff] (!%p1888_p4), %v1559_v29 }
 0x303   : > { %1503 = vst [vmem:[#allocation2 + $0x150] sm:$0xff] %v1439_v11  ;;  %1603 = vst [vmem:[%s2838_s15 + $0xd0] sm:$0xff] (!%p1888_p4), %v1555_v33  ;;  %v1560_v11 = vld [vmem:[#allocation2 + $0x148] sm:$0xff] (!%p1888_p4) }
 0x304   : > { %1504 = vst [vmem:[#allocation2 + $0x158] sm:$0xff] %v1440_v13  ;;  %v1368_v16 = vpop.f32.mrb[38].mxu1  ;;  %1608 = vst [vmem:[%s2838_s15 + $0xf8] sm:$0xff] (!%p1888_p4), %v1560_v11  ;;  %v1562_v13 = vld [vmem:[#allocation2 + $0x160] sm:$0xff] (!%p1888_p4) }
 0x305   : > { %v1443_v32 = vadd.f32 %v1368_v16, %v993_v14  ;;  %v1370_v43 = vpop.f32.mrb[39].mxu1  ;;  %v1563_v14 = vld [vmem:[#allocation2 + $0x168] sm:$0xff] (!%p1888_p4)  ;;  %1610 = vst [vmem:[%s2838_s15 + $0x108] sm:$0xff] (!%p1888_p4), %v1562_v13  ;;  %v1565_v16 = vld [vmem:[#allocation2 + $0x180] sm:$0xff] (!%p1888_p4) }
 0x306   : > { %v1444_v18 = vadd.f32 %v1370_v43, %v994_v15  ;;  %v1558_v20 = vld [vmem:[#allocation2 + $0x130] sm:$0xff] (!%p1888_p4)  ;;  %1611 = vst [vmem:[%s2838_s15 + $0x110] sm:$0xff] (!%p1888_p4), %v1563_v14  ;;  %1613 = vst [vmem:[%s2838_s15 + $0x120] sm:$0xff] (!%p1888_p4), %v1565_v16 }
 0x307   : > { %1507 = vst [vmem:[#allocation2 + $0x170] sm:$0xff] %v1443_v32  ;;  %1606 = vst [vmem:[%s2838_s15 + $0xe8] sm:$0xff] (!%p1888_p4), %v1558_v20  ;;  %v1566_v32 = vld [vmem:[#allocation2 + $0x188] sm:$0xff] (!%p1888_p4)  ;;  %v1634_v57 = vld [vmem:[#allocation2 + $0x138] sm:$0xff] (!%p1888_p4) }
 0x308   : > { %1508 = vst [vmem:[#allocation2 + $0x178] sm:$0xff] %v1444_v18  ;;  %v1374_v22 = vpop.f32.mrb[40].mxu1  ;;  %1614 = vst [vmem:[%s2838_s15 + $0x128] sm:$0xff] (!%p1888_p4), %v1566_v32  ;;  %v1568_v18 = vld [vmem:[#allocation2 + $0x1a0] sm:$0xff] (!%p1888_p4)  ;;  %v1650_v49 = vadd.f32 (!%p1888_p4), 0.02833327, %v1634_v57 }
 0x309   : > { %v1447_v23 = vadd.f32 %v1374_v22, %v997_v19  ;;  %v1376_v24 = vpop.f32.mrb[41].mxu1  ;;  %v1569_v19 = vld [vmem:[#allocation2 + $0x1a8] sm:$0xff] (!%p1888_p4)  ;;  %1616 = vst [vmem:[%s2838_s15 + $0x138] sm:$0xff] (!%p1888_p4), %v1568_v18  ;;  %v1571_v22 = vld [vmem:[#allocation2 + $0x1c0] sm:$0xff] (!%p1888_p4) }
 0x30a   : > { %v1448_v47 = vadd.f32 %v1376_v24, %v998_v21  ;;  %v1561_v12 = vld [vmem:[#allocation2 + $0x150] sm:$0xff] (!%p1888_p4)  ;;  %1617 = vst [vmem:[%s2838_s15 + $0x140] sm:$0xff] (!%p1888_p4), %v1569_v19  ;;  %1619 = vst [vmem:[%s2838_s15 + $0x150] sm:$0xff] (!%p1888_p4), %v1571_v22 }
 0x30b   : > { %1511 = vst [vmem:[#allocation2 + $0x190] sm:$0xff] %v1447_v23  ;;  %1609 = vst [vmem:[%s2838_s15 + $0x100] sm:$0xff] (!%p1888_p4), %v1561_v12  ;;  %v1572_v23 = vld [vmem:[#allocation2 + $0x1c8] sm:$0xff] (!%p1888_p4)  ;;  %v1635_v1 = vld [vmem:[#allocation2 + $0x158] sm:$0xff] (!%p1888_p4) }
 0x30c   : > { %1512 = vst [vmem:[#allocation2 + $0x198] sm:$0xff] %v1448_v47  ;;  %v1380_v58 = vpop.f32.mrb[42].mxu1  ;;  %1620 = vst [vmem:[%s2838_s15 + $0x158] sm:$0xff] (!%p1888_p4), %v1572_v23  ;;  %v1574_v47 = vld [vmem:[#allocation2 + $0x1e0] sm:$0xff] (!%p1888_p4)  ;;  %v1651_v50 = vadd.f32 (!%p1888_p4), 0.02833327, %v1635_v1 }
 0x30d   : > { %v1451_v25 = vadd.f32 %v1380_v58, %v1001_v37  ;;  %v1382_v26 = vpop.f32.mrb[43].mxu1  ;;  %v1575_v37 = vld [vmem:[#allocation2 + $0x1e8] sm:$0xff] (!%p1888_p4)  ;;  %1622 = vst [vmem:[%s2838_s15 + $0x168] sm:$0xff] (!%p1888_p4), %v1574_v47  ;;  %v1625_v58 = vld [vmem:[#allocation2 + $0x18] sm:$0xff] (!%p1888_p4)  ;;  %1666 = vst [vmem:[%s2840_s12 + $0x48] sm:$0xff] (!%p1888_p4), %v1650_v49 }
 0x30e   : > { %v1452_v27 = vadd.f32 %v1382_v26, %v1002_v42  ;;  %v1564_v15 = vld [vmem:[#allocation2 + $0x170] sm:$0xff] (!%p1888_p4)  ;;  %1623 = vst [vmem:[%s2838_s15 + $0x170] sm:$0xff] (!%p1888_p4), %v1575_v37  ;;  %v1627_v26 = vld [vmem:[#allocation2 + $0x58] sm:$0xff] (!%p1888_p4)  ;;  %1667 = vst [vmem:[%s2840_s12 + $0x50] sm:$0xff] (!%p1888_p4), %v1651_v50 }
 0x30f   : > { %1515 = vst [vmem:[#allocation2 + $0x1b0] sm:$0xff] %v1451_v25  ;;  %1612 = vst [vmem:[%s2838_s15 + $0x118] sm:$0xff] (!%p1888_p4), %v1564_v15  ;;  %v1626_v25 = vld [vmem:[#allocation2 + $0x38] sm:$0xff] (!%p1888_p4) }
 0x310   : > { %1516 = vst [vmem:[#allocation2 + $0x1b8] sm:$0xff] %v1452_v27  ;;  %v1386_v62 = vpop.f32.mrb[44].mxu1  ;;  %v1641_v27 = vadd.f32 (!%p1888_p4), 0.02833327, %v1625_v58  ;;  %v1636_v45 = vld [vmem:[#allocation2 + $0x178] sm:$0xff] (!%p1888_p4) }
 0x311   : > { %v1455_v30 = vadd.f32 %v1386_v62, %v1005_v46  ;;  %v1388_v31 = vpop.f32.mrb[45].mxu1  ;;  %v1642_v46 = vadd.f32 (!%p1888_p4), 0.02833327, %v1626_v25  ;;  %v1628_v62 = vld [vmem:[#allocation2 + $0x78] sm:$0xff] (!%p1888_p4)  ;;  %v1652_v51 = vadd.f32 (!%p1888_p4), 0.02833327, %v1636_v45 }
 0x312   : > { %v1456_v34 = vadd.f32 %v1388_v31, %v1006_v28  ;;  %1528 = sbr.rel (%p1888_p4) target bundleno = 803 (0x323), region = 52  ;;  %v1567_v43 = vld [vmem:[#allocation2 + $0x190] sm:$0xff] (!%p1888_p4)  ;;  %v1643_v28 = vadd.f32 (!%p1888_p4), 0.02833327, %v1627_v26  ;;  %v1630_v31 = vld [vmem:[#allocation2 + $0xb8] sm:$0xff] (!%p1888_p4)  ;;  %1657 = vst [vmem:[%s2840_s12] sm:$0xff] (!%p1888_p4), %v1641_v27 }
 0x313   : > { %1519 = vst [vmem:[#allocation2 + $0x1d0] sm:$0xff] %v1455_v30  ;;  %1615 = vst [vmem:[%s2838_s15 + $0x130] sm:$0xff] (!%p1888_p4), %v1567_v43  ;;  %v1629_v30 = vld [vmem:[#allocation2 + $0x98] sm:$0xff] (!%p1888_p4) }
 0x314   : > { %1520 = vst [vmem:[#allocation2 + $0x1d8] sm:$0xff] %v1456_v34  ;;  %v1392_v38 = vpop.f32.mrb[46].mxu1  ;;  %1658 = vst [vmem:[%s2840_s12 + $0x8] sm:$0xff] (!%p1888_p4), %v1642_v46  ;;  %v1644_v34 = vadd.f32 (!%p1888_p4), 0.02833327, %v1628_v62  ;;  %v1637_v2 = vld [vmem:[#allocation2 + $0x198] sm:$0xff] (!%p1888_p4) }
 0x315   : > { %v1459_v39 = vadd.f32 %v1392_v38, %v1009_v35  ;;  %v1394_v40 = vpop.f32.mrb[47].mxu1  ;;  %1659 = vst [vmem:[%s2840_s12 + $0x10] sm:$0xff] (!%p1888_p4), %v1643_v28  ;;  %v1645_v35 = vadd.f32 (!%p1888_p4), 0.02833327, %v1629_v30  ;;  %v1631_v38 = vld [vmem:[#allocation2 + $0xd8] sm:$0xff] (!%p1888_p4)  ;;  %1668 = vst [vmem:[%s2840_s12 + $0x58] sm:$0xff] (!%p1888_p4), %v1652_v51 }
 0x316   : > { %v1460_v48 = vadd.f32 %v1394_v40, %v1010_v36  ;;  %v1570_v21 = vld [vmem:[#allocation2 + $0x1b0] sm:$0xff] (!%p1888_p4)  ;;  %v1646_v36 = vadd.f32 (!%p1888_p4), 0.02833327, %v1630_v31  ;;  %v1633_v40 = vld [vmem:[#allocation2 + $0x118] sm:$0xff] (!%p1888_p4)  ;;  %1660 = vst [vmem:[%s2840_s12 + $0x18] sm:$0xff] (!%p1888_p4), %v1644_v34 }
 0x317   : > { %1523 = vst [vmem:[#allocation2 + $0x1f0] sm:$0xff] %v1459_v39  ;;  %1618 = vst [vmem:[%s2838_s15 + $0x148] sm:$0xff] (!%p1888_p4), %v1570_v21  ;;  %v1632_v39 = vld [vmem:[#allocation2 + $0xf8] sm:$0xff] (!%p1888_p4)  ;;  %v1649_v44 = vadd.f32 (!%p1888_p4), 0.02833327, %v1633_v40 }
 0x318   : > { %1524 = vst [vmem:[#allocation2 + $0x1f8] sm:$0xff] %v1460_v48  ;;  %1661 = vst [vmem:[%s2840_s12 + $0x20] sm:$0xff] (!%p1888_p4), %v1645_v35  ;;  %v1647_v48 = vadd.f32 (!%p1888_p4), 0.02833327, %v1631_v38  ;;  %v1648_v41 = vadd.f32 (!%p1888_p4), 0.02833327, %v1632_v39 }
 0x319   : > { %1662 = vst [vmem:[%s2840_s12 + $0x28] sm:$0xff] %v1646_v36  ;;  %1665 = vst [vmem:[%s2840_s12 + $0x40] sm:$0xff] %v1649_v44  ;;  %v1638_v52 = vld [vmem:[#allocation2 + $0x1b8] sm:$0xff]  ;;  %v1653_v5 = vadd.f32 0.02833327, %v1637_v2 }
 0x31a   : > { %v1573_v24 = vld [vmem:[#allocation2 + $0x1d0] sm:$0xff]  ;;  %1663 = vst [vmem:[%s2840_s12 + $0x30] sm:$0xff] %v1647_v48  ;;  %1664 = vst [vmem:[%s2840_s12 + $0x38] sm:$0xff] %v1648_v41  ;;  %v1654_v53 = vadd.f32 0.02833327, %v1638_v52 }
 0x31b   : > { %1621 = vst [vmem:[%s2838_s15 + $0x160] sm:$0xff] %v1573_v24  ;;  %v1639_v60 = vld [vmem:[#allocation2 + $0x1d8] sm:$0xff]  ;;  %1669 = vst [vmem:[%s2840_s12 + $0x60] sm:$0xff] %v1653_v5 }
 0x31c   : > { %v1655_v54 = vadd.f32 0.02833327, %v1639_v60  ;;  %1670 = vst [vmem:[%s2840_s12 + $0x68] sm:$0xff] %v1654_v53 }
 0x31e   : > { %v1576_v42 = vld [vmem:[#allocation2 + $0x1f0] sm:$0xff]  ;;  %1671 = vst [vmem:[%s2840_s12 + $0x70] sm:$0xff] %v1655_v54 }
 0x31f   : > { %1624 = vst [vmem:[%s2838_s15 + $0x178] sm:$0xff] %v1576_v42  ;;  %v1640_v55 = vld [vmem:[#allocation2 + $0x1f8] sm:$0xff] }
 0x320   : > { %v1656_v56 = vadd.f32 0.02833327, %v1640_v55 }
 0x322   : > { %1672 = vst [vmem:[%s2840_s12 + $0x78] sm:$0xff] %v1656_v56 }
 0x323 PF: > { %s2103_s21 = smul.u32 6144, %s2499_s22  ;;  %s1693_s26 = sshll.u32 %s2838_s15, 4  ;;  %s3259_s26 = int_to_ptr.vmem [resolvable:$true] %s1693_s26 }
 0x324   : > { %s3411_s9 = sld [smem:[#allocation26_spill]]  ;;  %s1674_s24 = scalar_lea.sflag [#allocation5], %s2817_s20 }
 0x325   : > { %s2353_s27 = scalar_lea.vmem %s3259_s26, 6144  ;;  %p3412_p3 = scmp.ne.s32.totalorder %s3399_s28, 0 }
 0x326   : > { %p2354_p1 = scmp.ne.s32.totalorder %s3259_s26, %s2353_s27  ;;  %s2522_s1 = smov [#allocation9]  }
 0x327   : > { %s2357_s23 = sshll.u32 %s2522_s1, 4  ;;  %s2358_s23 = int_to_ptr.vmem [resolvable:$false] %s2357_s23 }
 0x328   : > { %p2355_p2 = pnand %p2354_p1, %p3412_p3  ;;  %s2359_s4 = scalar_lea.vmem %s2358_s23, 12288 }
 0x329   : > { %p2360_p0 = scmp.lt.s32.totalorder %s3259_s26, %s2358_s23  ;;  %p2361_p7 = scmp.lt.s32.totalorder %s2359_s4, %s2353_s27 }
 0x32a   : > { %s3257_s11 = scalar_lea.hbm %s3411_s9, %s2103_s21  ;;  %p2356_p12 = pneg %p2355_p2 }
 0x32b   : > { %p2362_p8 = por %p2361_p7, %p2360_p0 }
 0x32d   : > { %p2363_p11 = pnand %p2362_p8, %p2356_p12 }
 0x32f   : > { %2366 = shalt.err (!%p2363_p11)
}
 0x330   : > { %s2367_s17 = scalar_lea.hbm %s3257_s11, 6144  ;;  %s2371_s14 = scalar_lea.hbm %s3411_s9, 12288 }
 0x331   : > { %p2368_p5 = scmp.ne.s32.totalorder %s3257_s11, %s2367_s17  ;;  %p2372_p9 = scmp.lt.u32.totalorder %s3257_s11, %s3411_s9 }
 0x332   : > { %p2373_p6 = scmp.lt.u32.totalorder %s2371_s14, %s2367_s17  ;;  %p2375_p1 = scmp.lt.u32.totalorder %s2367_s17, %s3257_s11 }
 0x333   : > { %p2369_p13 = pnand %p2368_p5, %p3412_p3 }
 0x334   : > { %p2374_p4 = por %p2373_p6, %p2372_p9 }
 0x335   : > { %p2370_p10 = pneg %p2369_p13 }
 0x336   : > { %p2376_p2 = por %p2375_p1, %p2374_p4 }
 0x338   : > { %p2377_p12 = pnand %p2376_p2, %p2370_p10 }
 0x33a   : > { %2380 = shalt.err (!%p2377_p12)
}
 0x33b   : > { %s2523_s30 = smov 384   ;;  %s2524_s8 = smov 24  }
 0x33c   : > { %2110 = dma.vmem_to_hbm [thread:$0]  (%p3412_p3), %s3259_s26, 6144, %s3257_s11, %s1674_s24, %s2523_s30, %s2523_s30, %s2524_s8  }
 0x33d   : > { %s1901_s13 = sshll.u32 %s2499_s22, 11  ;;  %s1709_s15 = sshll.u32 %s2840_s12, 4  ;;  %s3292_s15 = int_to_ptr.vmem [resolvable:$true] %s1709_s15 }
 0x33e   : > { %s3413_s3 = sld [smem:[#allocation27_spill]]  ;;  %s1679_s1 = scalar_lea.sflag [#allocation11], %s2817_s20 }
 0x33f   : > { %s2381_s23 = scalar_lea.vmem %s3292_s15, 2048  ;;  %s2525_s4 = smov [#allocation10]  }
 0x340   : > { %p2382_p0 = scmp.ne.s32.totalorder %s3292_s15, %s2381_s23  ;;  %s2385_s26 = sshll.u32 %s2525_s4, 4  ;;  %s2386_s26 = int_to_ptr.vmem [resolvable:$false] %s2385_s26 }
 0x341   : > { %s2387_s22 = scalar_lea.vmem %s2386_s26, 4096  ;;  %p2388_p11 = scmp.lt.s32.totalorder %s3292_s15, %s2386_s26 }
 0x342   : > { %p2383_p7 = pnand %p2382_p0, %p3412_p3  ;;  %p2389_p5 = scmp.lt.s32.totalorder %s2387_s22, %s2381_s23 }
 0x344   : > { %s3290_s27 = scalar_lea.hbm %s3413_s3, %s1901_s13  ;;  %p2384_p8 = pneg %p2383_p7 }
 0x345   : > { %p2390_p13 = por %p2389_p5, %p2388_p11 }
 0x347   : > { %p2391_p10 = pnand %p2390_p13, %p2384_p8 }
 0x349   : > { %2394 = shalt.err (!%p2391_p10)
}
 0x34a   : > { %s2395_s12 = scalar_lea.hbm %s3290_s27, 2048  ;;  %s2399_s17 = scalar_lea.hbm %s3413_s3, 4096 }
 0x34b   : > { %p2396_p9 = scmp.ne.s32.totalorder %s3290_s27, %s2395_s12  ;;  %p2400_p1 = scmp.lt.u32.totalorder %s3290_s27, %s3413_s3 }
 0x34c   : > { %p2401_p2 = scmp.lt.u32.totalorder %s2399_s17, %s2395_s12  ;;  %p2403_p0 = scmp.lt.u32.totalorder %s2395_s12, %s3290_s27 }
 0x34d   : > { %p2397_p6 = pnand %p2396_p9, %p3412_p3 }
 0x34e   : > { %p2402_p12 = por %p2401_p2, %p2400_p1 }
 0x34f   : > { %p2398_p4 = pneg %p2397_p6 }
 0x350   : > { %p2404_p7 = por %p2403_p0, %p2402_p12 }
 0x352   : > { %p2405_p8 = pnand %p2404_p7, %p2398_p4 }
 0x354   : > { %2408 = shalt.err (!%p2405_p8)
}
 0x355   : > { %s2526_s14 = smov 128   ;;  %s2527_s7 = smov 8  }
 0x356   : > { %2111 = dma.vmem_to_hbm [thread:$0]  (%p3412_p3), %s3292_s15, 2048, %s3290_s27, %s1679_s1, %s2526_s14, %s2526_s14, %s2527_s7  }
 0x357 PF: > { %s3414_s18 = sld [smem:[#allocation17_spill]]  ;;  %p2132_p11 = scmp.ge.s32.totalorder %s2511_s25, 2 }
 0x358   : > { %p3415_p5 = scmp.ne.s32.totalorder %s3400_s6, 0 }
 0x35a   : > { %p2125_p13 = pnand %p2132_p11, %p3415_p5 }
 0x35d   : > { %s1724_s30 = sand.u32 1, %s3414_s18  }
 0x35e   : > { %s1725_s8 = scalar_lea.sflag [#allocation5], %s1724_s30 }
 0x35f   : > { %2462 = dma.done.wait (!%p2125_p13), %s1725_s8, 6144  }
 0x360   : > { %2464 = vsyncadd (!%p2125_p13), %s1725_s8, 4294961152  ;;  %s1734_s13 = scalar_lea.sflag [#allocation11], %s1724_s30 }
 0x361   : > { %2466 = dma.done.wait (!%p2125_p13), %s1734_s13, 2048  }
 0x362   : > { %2468 = vsyncadd (!%p2125_p13), %s1734_s13, 4294965248  ;;  %s27_s25 = sadd.s32 1, %s2511_s25   ;;  %s3416_s28 = sld [smem:[#allocation16_spill]] }
 0x363   : > { %p24_p10 = scmp.ge.s32.totalorder %s27_s25, 8   ;;  %s3417_s17 = sld [smem:[#allocation22_spill]] }
 0x364   : > { %s3418_s20 = sld [smem:[#allocation18_spill]]  ;;  %s3419_s21 = sld [smem:[#allocation24_spill]] }
 0x365   : > { %s3420_s5 = sld [smem:[#allocation19_spill]]  ;;  %s3421_s22 = sld [smem:[#allocation20_spill]] }
 0x366   : > { %s3422_s23 = sld [smem:[#allocation21_spill]]  ;;  %s3423_s24 = sld [smem:[#allocation23_spill]] }
 0x367   : > { %s3424_s15 = smov %s2475_s16  ;;  %s3426_s18 = smov %s2487_s19 }
 0x368   : > { %s3425_s16 = smov %s3416_s28  ;;  %26 = sbr.rel (!%p24_p10) target bundleno = 17 (0x11), region = 126 }
 0x36a   : > { %s3427_s19 = smov %s3418_s20  ;;  %s3428_s20 = smov %s3419_s21 }
 0x36b   : > { %s3429_s21 = smov %s3420_s5 }
 0x36f   :  { %1739 = vsyncpa [#allocation4], 1 }
 0x370   :  { %1741 = vsyncpa [#allocation4 + $0x1], 1 }
 0x371   :  { %1742 = vsyncpa [#allocation7], 1 }
 0x372   :  { %1744 = vsyncpa [#allocation7 + $0x1], 1 }
 0x373   :  { %1745 = vsyncpa [#allocation5], 1 }
 0x374   :  { %1747 = vsyncpa [#allocation5 + $0x1], 1 }
 0x375   :  { %1748 = vsyncpa [#allocation11], 1 }
 0x376   :  { %1750 = vsyncpa [#allocation11 + $0x1], 1 }

</bundles_post_ra>
